<compile_context>
chip_gen: v6e
topology: v6e:2x2x1
jax: 0.10.0
libtpu: 0.0.40
codegen_flags: <defaults>
</compile_context>

<pallas_src>
import functools

import jax
import jax.numpy as jnp
from jax import lax
from jax.experimental import pallas as pl
from jax.experimental.pallas import tpu as pltpu

OUT_LANES = 128  # lane-dense output slab width


def _lstm_kernel(T, BP, GP,
                 x_ref, wih_ref, whh_ref, b_ref, wfc_ref, bfc_ref,
                 out_ref, xw_ref):
    """Whole-sequence LSTM + final FC in one invocation.

    x_ref   : (T*BP, D)     time-major rows (row = t*BP + b), batch zero-padded to BP
    wih_ref : (D, 4*GP)     gate-padded W_ih^T
    whh_ref : (GP, 4*GP)    gate-padded W_hh^T (rows >= H are zero)
    b_ref   : (1, 4*GP)     gate-padded (b_ih + b_hh)
    wfc_ref : (1, GP)       FC weight row, zero-padded past H
    bfc_ref : (1, 1)
    out_ref : (BP, 128)     lane-dense FC output slab (wrapper slices [:B, :1])
    xw_ref  : (T*BP, 4*GP)  VMEM scratch for the hoisted input projection
    """
    # 1) Hoisted input projection: one batched MXU matmul, off the serial path.
    xw_ref[...] = (jnp.dot(x_ref[...], wih_ref[...],
                           preferred_element_type=jnp.float32)
                   + b_ref[...])

    def step(t, carry):
        h, c = carry                                 # (BP, GP); pad lanes are 0
        row = pl.multiple_of(t * BP, 8)              # aligned (8, 4*GP) tile read
        # W_hh read from VMEM inside the loop (no 64-vreg live range / spills).
        gates = (xw_ref[pl.ds(row, BP), :]
                 + jnp.dot(h, whh_ref[...], preferred_element_type=jnp.float32))
        # PyTorch gate order i, f, g, o; each gate is its own 128-lane-aligned slab.
        i_g = jax.nn.sigmoid(gates[:, 0 * GP:1 * GP])
        f_g = jax.nn.sigmoid(gates[:, 1 * GP:2 * GP])
        g_g = jnp.tanh(gates[:, 2 * GP:3 * GP])
        o_g = jax.nn.sigmoid(gates[:, 3 * GP:4 * GP])
        c_new = f_g * c + i_g * g_g                  # pad lanes: 0.5*0 + 0.5*0 = 0
        h_new = o_g * jnp.tanh(c_new)                # pad lanes: 0.5*tanh(0)   = 0
        return h_new, c_new

    h0 = jnp.zeros((BP, GP), jnp.float32)
    c0 = jnp.zeros((BP, GP), jnp.float32)
    h, _ = lax.fori_loop(0, T, step, (h0, c0), unroll=True)

    # 2) Final FC as a VPU multiply + lane reduce (no one-column MXU matmul).
    y = jnp.sum(h * wfc_ref[...], axis=-1, keepdims=True) + bfc_ref[...]  # (BP, 1)
    # Lane-dense unmasked store; wrapper extracts column 0.
    out_ref[...] = jnp.broadcast_to(y, out_ref.shape).astype(out_ref.dtype)


def lstm_model_forward(x_btd, w_ih, w_hh, b_ih, b_hh, w_fc, b_fc):
    """x_btd: (B, T, D) float32 (PyTorch batch_first convention).
    w_ih: (4H, D), w_hh: (4H, H), b_ih/b_hh: (4H,), w_fc: (1, H), b_fc: (1,)."""
    B, T, D = x_btd.shape
    H4 = w_ih.shape[0]
    H = H4 // 4
    GP = ((H + 127) // 128) * 128        # per-gate lane-aligned slab width
    BP = ((B + 7) // 8) * 8              # sublane-aligned batch tile

    # ---- one-off layout glue (tiny XLA work, done once per call) -------------
    # Time-major rows, batch zero-padded to BP, so each step's gate slab read is
    # a full aligned (8, 4*GP) tile starting at a multiple-of-8 sublane.
    x_tm = jnp.transpose(x_btd, (1, 0, 2))                       # (T, B, D)
    x_tm = jnp.pad(x_tm, ((0, 0), (0, BP - B), (0, 0)))          # (T, BP, D)
    x2d = x_tm.reshape(T * BP, D)                                # row = t*BP + b

    b_sum = b_ih + b_hh
    wih_pad = jnp.zeros((D, 4 * GP), jnp.float32)
    whh_pad = jnp.zeros((GP, 4 * GP), jnp.float32)
    b_pad = jnp.zeros((1, 4 * GP), jnp.float32)
    for k in range(4):                   # gate order i, f, g, o
        wih_pad = wih_pad.at[:, k * GP:k * GP + H].set(w_ih[k * H:(k + 1) * H, :].T)
        whh_pad = whh_pad.at[:H, k * GP:k * GP + H].set(w_hh[k * H:(k + 1) * H, :].T)
        b_pad = b_pad.at[0, k * GP:k * GP + H].set(b_sum[k * H:(k + 1) * H])
    wfc_pad = jnp.zeros((1, GP), jnp.float32).at[0, :H].set(w_fc[0])
    bfc = b_fc.reshape(1, 1)

    kernel = functools.partial(_lstm_kernel, T, BP, GP)
    vmem_specs = [pl.BlockSpec(memory_space=pltpu.MemorySpace.VMEM)
                  for _ in range(6)]

    out_pad = pl.pallas_call(
        kernel,
        out_shape=jax.ShapeDtypeStruct((BP, OUT_LANES), jnp.float32),
        in_specs=vmem_specs,
        out_specs=pl.BlockSpec(memory_space=pltpu.MemorySpace.VMEM),
        scratch_shapes=[pltpu.VMEM((T * BP, 4 * GP), jnp.float32)],
    )(x2d, wih_pad, whh_pad, b_pad, wfc_pad, bfc)

    return out_pad[:B, :1]


def lstm_model_reference(x_btd, w_ih, w_hh, b_ih, b_hh, w_fc, b_fc):
    """Pure-JAX reference matching PyTorch nn.LSTM semantics."""
    B, T, D = x_btd.shape
    H = w_hh.shape[1]
    h = jnp.zeros((B, H), jnp.float32)
    c = jnp.zeros((B, H), jnp.float32)

    def step(carry, x_t):
        h, c = carry
        gates = x_t @ w_ih.T + b_ih + h @ w_hh.T + b_hh
        i = jax.nn.sigmoid(gates[:, 0 * H:1 * H])
        f = jax.nn.sigmoid(gates[:, 1 * H:2 * H])
        g = jnp.tanh(gates[:, 2 * H:3 * H])
        o = jax.nn.sigmoid(gates[:, 3 * H:4 * H])
        c = f * c + i * g
        h = o * jnp.tanh(c)
        return (h, c), None

    (h, c), _ = jax.lax.scan(step, (h, c), jnp.transpose(x_btd, (1, 0, 2)))
    return h @ w_fc.T + b_fc


if __name__ == "__main__":
    B, T, D, H = 2, 8, 16, 32

    key = jax.random.PRNGKey(0)
    ks = jax.random.split(key, 7)
    bound = 1.0 / jnp.sqrt(H)
    w_ih = jax.random.uniform(ks[0], (4 * H, D), jnp.float32, -bound, bound)
    w_hh = jax.random.uniform(ks[1], (4 * H, H), jnp.float32, -bound, bound)
    b_ih = jax.random.uniform(ks[2], (4 * H,), jnp.float32, -bound, bound)
    b_hh = jax.random.uniform(ks[3], (4 * H,), jnp.float32, -bound, bound)
    w_fc = jax.random.uniform(ks[4], (1, H), jnp.float32, -bound, bound)
    b_fc = jax.random.uniform(ks[5], (1,), jnp.float32, -bound, bound)
    x = jax.random.normal(ks[6], (B, T, D), jnp.float32)

    out = lstm_model_forward(x, w_ih, w_hh, b_ih, b_hh, w_fc, b_fc)
    out = jax.block_until_ready(out)

    ref = lstm_model_reference(x, w_ih, w_hh, b_ih, b_hh, w_fc, b_fc)
    assert out.shape == (B, 1), out.shape
    assert jnp.allclose(out, ref, atol=1e-5, rtol=1e-5), (out, ref)

    print("KERNEL_OK")
</pallas_src>

<mosaic_0001>
module attributes {stable_mosaic.version = 11 : i64} {
  func.func @_lstm_kernel(%arg0: memref<64x16xf32, #tpu.memory_space<vmem>>, %arg1: memref<16x512xf32, #tpu.memory_space<vmem>>, %arg2: memref<128x512xf32, #tpu.memory_space<vmem>>, %arg3: memref<1x512xf32, #tpu.memory_space<vmem>>, %arg4: memref<1x128xf32, #tpu.memory_space<vmem>>, %arg5: memref<1x1xf32, #tpu.memory_space<vmem>>, %arg6: memref<8x128xf32, #tpu.memory_space<vmem>>, %arg7: memref<64x512xf32, #tpu.memory_space<vmem>>) attributes {dimension_semantics = [], scalar_prefetch = 0 : i64, scratch_operands = 1 : i64, tpu.core_type = #tpu.core_type<tc>} {
    %c0 = arith.constant 0 : index
    %c0_0 = arith.constant 0 : index
    %0 = vector.load %arg0[%c0, %c0_0] : memref<64x16xf32, #tpu.memory_space<vmem>>, vector<64x16xf32>
    %c0_1 = arith.constant 0 : index
    %c0_2 = arith.constant 0 : index
    %1 = vector.load %arg1[%c0_1, %c0_2] : memref<16x512xf32, #tpu.memory_space<vmem>>, vector<16x512xf32>
    %cst = arith.constant dense<0.000000e+00> : vector<64x512xf32>
    %2 = tpu.matmul %0, %1, %cst {dimension_numbers = #tpu.dot_dimension_numbers<[1], [0], [0], [1], [0, 0, 1, 1], [], []>} : vector<64x16xf32>, vector<16x512xf32>, vector<64x512xf32> -> vector<64x512xf32>
    %c0_3 = arith.constant 0 : index
    %c0_4 = arith.constant 0 : index
    %3 = vector.load %arg3[%c0_3, %c0_4] : memref<1x512xf32, #tpu.memory_space<vmem>>, vector<1x512xf32>
    %4 = vector.broadcast %3 : vector<1x512xf32> to vector<64x512xf32>
    %5 = arith.addf %2, %4 : vector<64x512xf32>
    %c0_5 = arith.constant 0 : index
    %c0_6 = arith.constant 0 : index
    %6 = vector.load %arg7[%c0_5, %c0_6] : memref<64x512xf32, #tpu.memory_space<vmem>>, vector<64x512xf32>
    tpu.vector_store %arg7[%c0_5, %c0_6], %5 {strides = array<i32>} : memref<64x512xf32, #tpu.memory_space<vmem>>, vector<64x512xf32>,
    %cst_7 = arith.constant 0.000000e+00 : f32
    %7 = vector.broadcast %cst_7 : f32 to vector<8x128xf32>
    %cst_8 = arith.constant 0.000000e+00 : f32
    %8 = vector.broadcast %cst_8 : f32 to vector<8x128xf32>
    %c0_i32 = arith.constant 0 : i32
    %c8_i32 = arith.constant 8 : i32
    %9 = arith.muli %c0_i32, %c8_i32 : i32
    %10 = tpu.assume_multiple %9, 8 : i32
    %11 = arith.index_cast %10 : i32 to index
    %c0_9 = arith.constant 0 : index
    %12 = vector.load %arg7[%11, %c0_9] : memref<64x512xf32, #tpu.memory_space<vmem>>, vector<8x512xf32>
    %c0_10 = arith.constant 0 : index
    %c0_11 = arith.constant 0 : index
    %13 = vector.load %arg2[%c0_10, %c0_11] : memref<128x512xf32, #tpu.memory_space<vmem>>, vector<128x512xf32>
    %cst_12 = arith.constant dense<0.000000e+00> : vector<8x512xf32>
    %14 = tpu.matmul %7, %13, %cst_12 {dimension_numbers = #tpu.dot_dimension_numbers<[1], [0], [0], [1], [0, 0, 1, 1], [], []>} : vector<8x128xf32>, vector<128x512xf32>, vector<8x512xf32> -> vector<8x512xf32>
    %15 = arith.addf %12, %14 : vector<8x512xf32>
    %16 = vector.extract_strided_slice %15 {offsets = [0, 0], sizes = [8, 128], strides = [1, 1]} : vector<8x512xf32> to vector<8x128xf32>
    %17 = arith.negf %16 : vector<8x128xf32>
    %18 = math.exp %17 : vector<8x128xf32>
    %cst_13 = arith.constant 1.000000e+00 : f32
    %19 = vector.broadcast %cst_13 : f32 to vector<8x128xf32>
    %20 = arith.addf %19, %18 : vector<8x128xf32>
    %21 = arith.divf %19, %20 : vector<8x128xf32>
    %22 = vector.extract_strided_slice %15 {offsets = [0, 128], sizes = [8, 128], strides = [1, 1]} : vector<8x512xf32> to vector<8x128xf32>
    %23 = arith.negf %22 : vector<8x128xf32>
    %24 = math.exp %23 : vector<8x128xf32>
    %cst_14 = arith.constant 1.000000e+00 : f32
    %25 = vector.broadcast %cst_14 : f32 to vector<8x128xf32>
    %26 = arith.addf %25, %24 : vector<8x128xf32>
    %27 = arith.divf %25, %26 : vector<8x128xf32>
    %28 = vector.extract_strided_slice %15 {offsets = [0, 256], sizes = [8, 128], strides = [1, 1]} : vector<8x512xf32> to vector<8x128xf32>
    %29 = math.tanh %28 : vector<8x128xf32>
    %30 = vector.extract_strided_slice %15 {offsets = [0, 384], sizes = [8, 128], strides = [1, 1]} : vector<8x512xf32> to vector<8x128xf32>
    %31 = arith.negf %30 : vector<8x128xf32>
    %32 = math.exp %31 : vector<8x128xf32>
    %cst_15 = arith.constant 1.000000e+00 : f32
    %33 = vector.broadcast %cst_15 : f32 to vector<8x128xf32>
    %34 = arith.addf %33, %32 : vector<8x128xf32>
    %35 = arith.divf %33, %34 : vector<8x128xf32>
    %36 = arith.mulf %27, %8 : vector<8x128xf32>
    %37 = arith.mulf %21, %29 : vector<8x128xf32>
    %38 = arith.addf %36, %37 : vector<8x128xf32>
    %39 = math.tanh %38 : vector<8x128xf32>
    %40 = arith.mulf %35, %39 : vector<8x128xf32>
    %c1_i32 = arith.constant 1 : i32
    %c8_i32_16 = arith.constant 8 : i32
    %41 = arith.muli %c1_i32, %c8_i32_16 : i32
    %42 = tpu.assume_multiple %41, 8 : i32
    %43 = arith.index_cast %42 : i32 to index
    %c0_17 = arith.constant 0 : index
    %44 = vector.load %arg7[%43, %c0_17] : memref<64x512xf32, #tpu.memory_space<vmem>>, vector<8x512xf32>
    %c0_18 = arith.constant 0 : index
    %c0_19 = arith.constant 0 : index
    %45 = vector.load %arg2[%c0_18, %c0_19] : memref<128x512xf32, #tpu.memory_space<vmem>>, vector<128x512xf32>
    %cst_20 = arith.constant dense<0.000000e+00> : vector<8x512xf32>
    %46 = tpu.matmul %40, %45, %cst_20 {dimension_numbers = #tpu.dot_dimension_numbers<[1], [0], [0], [1], [0, 0, 1, 1], [], []>} : vector<8x128xf32>, vector<128x512xf32>, vector<8x512xf32> -> vector<8x512xf32>
    %47 = arith.addf %44, %46 : vector<8x512xf32>
    %48 = vector.extract_strided_slice %47 {offsets = [0, 0], sizes = [8, 128], strides = [1, 1]} : vector<8x512xf32> to vector<8x128xf32>
    %49 = arith.negf %48 : vector<8x128xf32>
    %50 = math.exp %49 : vector<8x128xf32>
    %cst_21 = arith.constant 1.000000e+00 : f32
    %51 = vector.broadcast %cst_21 : f32 to vector<8x128xf32>
    %52 = arith.addf %51, %50 : vector<8x128xf32>
    %53 = arith.divf %51, %52 : vector<8x128xf32>
    %54 = vector.extract_strided_slice %47 {offsets = [0, 128], sizes = [8, 128], strides = [1, 1]} : vector<8x512xf32> to vector<8x128xf32>
    %55 = arith.negf %54 : vector<8x128xf32>
    %56 = math.exp %55 : vector<8x128xf32>
    %cst_22 = arith.constant 1.000000e+00 : f32
    %57 = vector.broadcast %cst_22 : f32 to vector<8x128xf32>
    %58 = arith.addf %57, %56 : vector<8x128xf32>
    %59 = arith.divf %57, %58 : vector<8x128xf32>
    %60 = vector.extract_strided_slice %47 {offsets = [0, 256], sizes = [8, 128], strides = [1, 1]} : vector<8x512xf32> to vector<8x128xf32>
    %61 = math.tanh %60 : vector<8x128xf32>
    %62 = vector.extract_strided_slice %47 {offsets = [0, 384], sizes = [8, 128], strides = [1, 1]} : vector<8x512xf32> to vector<8x128xf32>
    %63 = arith.negf %62 : vector<8x128xf32>
    %64 = math.exp %63 : vector<8x128xf32>
    %cst_23 = arith.constant 1.000000e+00 : f32
    %65 = vector.broadcast %cst_23 : f32 to vector<8x128xf32>
    %66 = arith.addf %65, %64 : vector<8x128xf32>
    %67 = arith.divf %65, %66 : vector<8x128xf32>
    %68 = arith.mulf %59, %38 : vector<8x128xf32>
    %69 = arith.mulf %53, %61 : vector<8x128xf32>
    %70 = arith.addf %68, %69 : vector<8x128xf32>
    %71 = math.tanh %70 : vector<8x128xf32>
    %72 = arith.mulf %67, %71 : vector<8x128xf32>
    %c2_i32 = arith.constant 2 : i32
    %c8_i32_24 = arith.constant 8 : i32
    %73 = arith.muli %c2_i32, %c8_i32_24 : i32
    %74 = tpu.assume_multiple %73, 8 : i32
    %75 = arith.index_cast %74 : i32 to index
    %c0_25 = arith.constant 0 : index
    %76 = vector.load %arg7[%75, %c0_25] : memref<64x512xf32, #tpu.memory_space<vmem>>, vector<8x512xf32>
    %c0_26 = arith.constant 0 : index
    %c0_27 = arith.constant 0 : index
    %77 = vector.load %arg2[%c0_26, %c0_27] : memref<128x512xf32, #tpu.memory_space<vmem>>, vector<128x512xf32>
    %cst_28 = arith.constant dense<0.000000e+00> : vector<8x512xf32>
    %78 = tpu.matmul %72, %77, %cst_28 {dimension_numbers = #tpu.dot_dimension_numbers<[1], [0], [0], [1], [0, 0, 1, 1], [], []>} : vector<8x128xf32>, vector<128x512xf32>, vector<8x512xf32> -> vector<8x512xf32>
    %79 = arith.addf %76, %78 : vector<8x512xf32>
    %80 = vector.extract_strided_slice %79 {offsets = [0, 0], sizes = [8, 128], strides = [1, 1]} : vector<8x512xf32> to vector<8x128xf32>
    %81 = arith.negf %80 : vector<8x128xf32>
    %82 = math.exp %81 : vector<8x128xf32>
    %cst_29 = arith.constant 1.000000e+00 : f32
    %83 = vector.broadcast %cst_29 : f32 to vector<8x128xf32>
    %84 = arith.addf %83, %82 : vector<8x128xf32>
    %85 = arith.divf %83, %84 : vector<8x128xf32>
    %86 = vector.extract_strided_slice %79 {offsets = [0, 128], sizes = [8, 128], strides = [1, 1]} : vector<8x512xf32> to vector<8x128xf32>
    %87 = arith.negf %86 : vector<8x128xf32>
    %88 = math.exp %87 : vector<8x128xf32>
    %cst_30 = arith.constant 1.000000e+00 : f32
    %89 = vector.broadcast %cst_30 : f32 to vector<8x128xf32>
    %90 = arith.addf %89, %88 : vector<8x128xf32>
    %91 = arith.divf %89, %90 : vector<8x128xf32>
    %92 = vector.extract_strided_slice %79 {offsets = [0, 256], sizes = [8, 128], strides = [1, 1]} : vector<8x512xf32> to vector<8x128xf32>
    %93 = math.tanh %92 : vector<8x128xf32>
    %94 = vector.extract_strided_slice %79 {offsets = [0, 384], sizes = [8, 128], strides = [1, 1]} : vector<8x512xf32> to vector<8x128xf32>
    %95 = arith.negf %94 : vector<8x128xf32>
    %96 = math.exp %95 : vector<8x128xf32>
    %cst_31 = arith.constant 1.000000e+00 : f32
    %97 = vector.broadcast %cst_31 : f32 to vector<8x128xf32>
    %98 = arith.addf %97, %96 : vector<8x128xf32>
    %99 = arith.divf %97, %98 : vector<8x128xf32>
    %100 = arith.mulf %91, %70 : vector<8x128xf32>
    %101 = arith.mulf %85, %93 : vector<8x128xf32>
    %102 = arith.addf %100, %101 : vector<8x128xf32>
    %103 = math.tanh %102 : vector<8x128xf32>
    %104 = arith.mulf %99, %103 : vector<8x128xf32>
    %c3_i32 = arith.constant 3 : i32
    %c8_i32_32 = arith.constant 8 : i32
    %105 = arith.muli %c3_i32, %c8_i32_32 : i32
    %106 = tpu.assume_multiple %105, 8 : i32
    %107 = arith.index_cast %106 : i32 to index
    %c0_33 = arith.constant 0 : index
    %108 = vector.load %arg7[%107, %c0_33] : memref<64x512xf32, #tpu.memory_space<vmem>>, vector<8x512xf32>
    %c0_34 = arith.constant 0 : index
    %c0_35 = arith.constant 0 : index
    %109 = vector.load %arg2[%c0_34, %c0_35] : memref<128x512xf32, #tpu.memory_space<vmem>>, vector<128x512xf32>
    %cst_36 = arith.constant dense<0.000000e+00> : vector<8x512xf32>
    %110 = tpu.matmul %104, %109, %cst_36 {dimension_numbers = #tpu.dot_dimension_numbers<[1], [0], [0], [1], [0, 0, 1, 1], [], []>} : vector<8x128xf32>, vector<128x512xf32>, vector<8x512xf32> -> vector<8x512xf32>
    %111 = arith.addf %108, %110 : vector<8x512xf32>
    %112 = vector.extract_strided_slice %111 {offsets = [0, 0], sizes = [8, 128], strides = [1, 1]} : vector<8x512xf32> to vector<8x128xf32>
    %113 = arith.negf %112 : vector<8x128xf32>
    %114 = math.exp %113 : vector<8x128xf32>
    %cst_37 = arith.constant 1.000000e+00 : f32
    %115 = vector.broadcast %cst_37 : f32 to vector<8x128xf32>
    %116 = arith.addf %115, %114 : vector<8x128xf32>
    %117 = arith.divf %115, %116 : vector<8x128xf32>
    %118 = vector.extract_strided_slice %111 {offsets = [0, 128], sizes = [8, 128], strides = [1, 1]} : vector<8x512xf32> to vector<8x128xf32>
    %119 = arith.negf %118 : vector<8x128xf32>
    %120 = math.exp %119 : vector<8x128xf32>
    %cst_38 = arith.constant 1.000000e+00 : f32
    %121 = vector.broadcast %cst_38 : f32 to vector<8x128xf32>
    %122 = arith.addf %121, %120 : vector<8x128xf32>
    %123 = arith.divf %121, %122 : vector<8x128xf32>
    %124 = vector.extract_strided_slice %111 {offsets = [0, 256], sizes = [8, 128], strides = [1, 1]} : vector<8x512xf32> to vector<8x128xf32>
    %125 = math.tanh %124 : vector<8x128xf32>
    %126 = vector.extract_strided_slice %111 {offsets = [0, 384], sizes = [8, 128], strides = [1, 1]} : vector<8x512xf32> to vector<8x128xf32>
    %127 = arith.negf %126 : vector<8x128xf32>
    %128 = math.exp %127 : vector<8x128xf32>
    %cst_39 = arith.constant 1.000000e+00 : f32
    %129 = vector.broadcast %cst_39 : f32 to vector<8x128xf32>
    %130 = arith.addf %129, %128 : vector<8x128xf32>
    %131 = arith.divf %129, %130 : vector<8x128xf32>
    %132 = arith.mulf %123, %102 : vector<8x128xf32>
    %133 = arith.mulf %117, %125 : vector<8x128xf32>
    %134 = arith.addf %132, %133 : vector<8x128xf32>
    %135 = math.tanh %134 : vector<8x128xf32>
    %136 = arith.mulf %131, %135 : vector<8x128xf32>
    %c4_i32 = arith.constant 4 : i32
    %c8_i32_40 = arith.constant 8 : i32
    %137 = arith.muli %c4_i32, %c8_i32_40 : i32
    %138 = tpu.assume_multiple %137, 8 : i32
    %139 = arith.index_cast %138 : i32 to index
    %c0_41 = arith.constant 0 : index
    %140 = vector.load %arg7[%139, %c0_41] : memref<64x512xf32, #tpu.memory_space<vmem>>, vector<8x512xf32>
    %c0_42 = arith.constant 0 : index
    %c0_43 = arith.constant 0 : index
    %141 = vector.load %arg2[%c0_42, %c0_43] : memref<128x512xf32, #tpu.memory_space<vmem>>, vector<128x512xf32>
    %cst_44 = arith.constant dense<0.000000e+00> : vector<8x512xf32>
    %142 = tpu.matmul %136, %141, %cst_44 {dimension_numbers = #tpu.dot_dimension_numbers<[1], [0], [0], [1], [0, 0, 1, 1], [], []>} : vector<8x128xf32>, vector<128x512xf32>, vector<8x512xf32> -> vector<8x512xf32>
    %143 = arith.addf %140, %142 : vector<8x512xf32>
    %144 = vector.extract_strided_slice %143 {offsets = [0, 0], sizes = [8, 128], strides = [1, 1]} : vector<8x512xf32> to vector<8x128xf32>
    %145 = arith.negf %144 : vector<8x128xf32>
    %146 = math.exp %145 : vector<8x128xf32>
    %cst_45 = arith.constant 1.000000e+00 : f32
    %147 = vector.broadcast %cst_45 : f32 to vector<8x128xf32>
    %148 = arith.addf %147, %146 : vector<8x128xf32>
    %149 = arith.divf %147, %148 : vector<8x128xf32>
    %150 = vector.extract_strided_slice %143 {offsets = [0, 128], sizes = [8, 128], strides = [1, 1]} : vector<8x512xf32> to vector<8x128xf32>
    %151 = arith.negf %150 : vector<8x128xf32>
    %152 = math.exp %151 : vector<8x128xf32>
    %cst_46 = arith.constant 1.000000e+00 : f32
    %153 = vector.broadcast %cst_46 : f32 to vector<8x128xf32>
    %154 = arith.addf %153, %152 : vector<8x128xf32>
    %155 = arith.divf %153, %154 : vector<8x128xf32>
    %156 = vector.extract_strided_slice %143 {offsets = [0, 256], sizes = [8, 128], strides = [1, 1]} : vector<8x512xf32> to vector<8x128xf32>
    %157 = math.tanh %156 : vector<8x128xf32>
    %158 = vector.extract_strided_slice %143 {offsets = [0, 384], sizes = [8, 128], strides = [1, 1]} : vector<8x512xf32> to vector<8x128xf32>
    %159 = arith.negf %158 : vector<8x128xf32>
    %160 = math.exp %159 : vector<8x128xf32>
    %cst_47 = arith.constant 1.000000e+00 : f32
    %161 = vector.broadcast %cst_47 : f32 to vector<8x128xf32>
    %162 = arith.addf %161, %160 : vector<8x128xf32>
    %163 = arith.divf %161, %162 : vector<8x128xf32>
    %164 = arith.mulf %155, %134 : vector<8x128xf32>
    %165 = arith.mulf %149, %157 : vector<8x128xf32>
    %166 = arith.addf %164, %165 : vector<8x128xf32>
    %167 = math.tanh %166 : vector<8x128xf32>
    %168 = arith.mulf %163, %167 : vector<8x128xf32>
    %c5_i32 = arith.constant 5 : i32
    %c8_i32_48 = arith.constant 8 : i32
    %169 = arith.muli %c5_i32, %c8_i32_48 : i32
    %170 = tpu.assume_multiple %169, 8 : i32
    %171 = arith.index_cast %170 : i32 to index
    %c0_49 = arith.constant 0 : index
    %172 = vector.load %arg7[%171, %c0_49] : memref<64x512xf32, #tpu.memory_space<vmem>>, vector<8x512xf32>
    %c0_50 = arith.constant 0 : index
    %c0_51 = arith.constant 0 : index
    %173 = vector.load %arg2[%c0_50, %c0_51] : memref<128x512xf32, #tpu.memory_space<vmem>>, vector<128x512xf32>
    %cst_52 = arith.constant dense<0.000000e+00> : vector<8x512xf32>
    %174 = tpu.matmul %168, %173, %cst_52 {dimension_numbers = #tpu.dot_dimension_numbers<[1], [0], [0], [1], [0, 0, 1, 1], [], []>} : vector<8x128xf32>, vector<128x512xf32>, vector<8x512xf32> -> vector<8x512xf32>
    %175 = arith.addf %172, %174 : vector<8x512xf32>
    %176 = vector.extract_strided_slice %175 {offsets = [0, 0], sizes = [8, 128], strides = [1, 1]} : vector<8x512xf32> to vector<8x128xf32>
    %177 = arith.negf %176 : vector<8x128xf32>
    %178 = math.exp %177 : vector<8x128xf32>
    %cst_53 = arith.constant 1.000000e+00 : f32
    %179 = vector.broadcast %cst_53 : f32 to vector<8x128xf32>
    %180 = arith.addf %179, %178 : vector<8x128xf32>
    %181 = arith.divf %179, %180 : vector<8x128xf32>
    %182 = vector.extract_strided_slice %175 {offsets = [0, 128], sizes = [8, 128], strides = [1, 1]} : vector<8x512xf32> to vector<8x128xf32>
    %183 = arith.negf %182 : vector<8x128xf32>
    %184 = math.exp %183 : vector<8x128xf32>
    %cst_54 = arith.constant 1.000000e+00 : f32
    %185 = vector.broadcast %cst_54 : f32 to vector<8x128xf32>
    %186 = arith.addf %185, %184 : vector<8x128xf32>
    %187 = arith.divf %185, %186 : vector<8x128xf32>
    %188 = vector.extract_strided_slice %175 {offsets = [0, 256], sizes = [8, 128], strides = [1, 1]} : vector<8x512xf32> to vector<8x128xf32>
    %189 = math.tanh %188 : vector<8x128xf32>
    %190 = vector.extract_strided_slice %175 {offsets = [0, 384], sizes = [8, 128], strides = [1, 1]} : vector<8x512xf32> to vector<8x128xf32>
    %191 = arith.negf %190 : vector<8x128xf32>
    %192 = math.exp %191 : vector<8x128xf32>
    %cst_55 = arith.constant 1.000000e+00 : f32
    %193 = vector.broadcast %cst_55 : f32 to vector<8x128xf32>
    %194 = arith.addf %193, %192 : vector<8x128xf32>
    %195 = arith.divf %193, %194 : vector<8x128xf32>
    %196 = arith.mulf %187, %166 : vector<8x128xf32>
    %197 = arith.mulf %181, %189 : vector<8x128xf32>
    %198 = arith.addf %196, %197 : vector<8x128xf32>
    %199 = math.tanh %198 : vector<8x128xf32>
    %200 = arith.mulf %195, %199 : vector<8x128xf32>
    %c6_i32 = arith.constant 6 : i32
    %c8_i32_56 = arith.constant 8 : i32
    %201 = arith.muli %c6_i32, %c8_i32_56 : i32
    %202 = tpu.assume_multiple %201, 8 : i32
    %203 = arith.index_cast %202 : i32 to index
    %c0_57 = arith.constant 0 : index
    %204 = vector.load %arg7[%203, %c0_57] : memref<64x512xf32, #tpu.memory_space<vmem>>, vector<8x512xf32>
    %c0_58 = arith.constant 0 : index
    %c0_59 = arith.constant 0 : index
    %205 = vector.load %arg2[%c0_58, %c0_59] : memref<128x512xf32, #tpu.memory_space<vmem>>, vector<128x512xf32>
    %cst_60 = arith.constant dense<0.000000e+00> : vector<8x512xf32>
    %206 = tpu.matmul %200, %205, %cst_60 {dimension_numbers = #tpu.dot_dimension_numbers<[1], [0], [0], [1], [0, 0, 1, 1], [], []>} : vector<8x128xf32>, vector<128x512xf32>, vector<8x512xf32> -> vector<8x512xf32>
    %207 = arith.addf %204, %206 : vector<8x512xf32>
    %208 = vector.extract_strided_slice %207 {offsets = [0, 0], sizes = [8, 128], strides = [1, 1]} : vector<8x512xf32> to vector<8x128xf32>
    %209 = arith.negf %208 : vector<8x128xf32>
    %210 = math.exp %209 : vector<8x128xf32>
    %cst_61 = arith.constant 1.000000e+00 : f32
    %211 = vector.broadcast %cst_61 : f32 to vector<8x128xf32>
    %212 = arith.addf %211, %210 : vector<8x128xf32>
    %213 = arith.divf %211, %212 : vector<8x128xf32>
    %214 = vector.extract_strided_slice %207 {offsets = [0, 128], sizes = [8, 128], strides = [1, 1]} : vector<8x512xf32> to vector<8x128xf32>
    %215 = arith.negf %214 : vector<8x128xf32>
    %216 = math.exp %215 : vector<8x128xf32>
    %cst_62 = arith.constant 1.000000e+00 : f32
    %217 = vector.broadcast %cst_62 : f32 to vector<8x128xf32>
    %218 = arith.addf %217, %216 : vector<8x128xf32>
    %219 = arith.divf %217, %218 : vector<8x128xf32>
    %220 = vector.extract_strided_slice %207 {offsets = [0, 256], sizes = [8, 128], strides = [1, 1]} : vector<8x512xf32> to vector<8x128xf32>
    %221 = math.tanh %220 : vector<8x128xf32>
    %222 = vector.extract_strided_slice %207 {offsets = [0, 384], sizes = [8, 128], strides = [1, 1]} : vector<8x512xf32> to vector<8x128xf32>
    %223 = arith.negf %222 : vector<8x128xf32>
    %224 = math.exp %223 : vector<8x128xf32>
    %cst_63 = arith.constant 1.000000e+00 : f32
    %225 = vector.broadcast %cst_63 : f32 to vector<8x128xf32>
    %226 = arith.addf %225, %224 : vector<8x128xf32>
    %227 = arith.divf %225, %226 : vector<8x128xf32>
    %228 = arith.mulf %219, %198 : vector<8x128xf32>
    %229 = arith.mulf %213, %221 : vector<8x128xf32>
    %230 = arith.addf %228, %229 : vector<8x128xf32>
    %231 = math.tanh %230 : vector<8x128xf32>
    %232 = arith.mulf %227, %231 : vector<8x128xf32>
    %c7_i32 = arith.constant 7 : i32
    %c8_i32_64 = arith.constant 8 : i32
    %233 = arith.muli %c7_i32, %c8_i32_64 : i32
    %234 = tpu.assume_multiple %233, 8 : i32
    %235 = arith.index_cast %234 : i32 to index
    %c0_65 = arith.constant 0 : index
    %236 = vector.load %arg7[%235, %c0_65] : memref<64x512xf32, #tpu.memory_space<vmem>>, vector<8x512xf32>
    %c0_66 = arith.constant 0 : index
    %c0_67 = arith.constant 0 : index
    %237 = vector.load %arg2[%c0_66, %c0_67] : memref<128x512xf32, #tpu.memory_space<vmem>>, vector<128x512xf32>
    %cst_68 = arith.constant dense<0.000000e+00> : vector<8x512xf32>
    %238 = tpu.matmul %232, %237, %cst_68 {dimension_numbers = #tpu.dot_dimension_numbers<[1], [0], [0], [1], [0, 0, 1, 1], [], []>} : vector<8x128xf32>, vector<128x512xf32>, vector<8x512xf32> -> vector<8x512xf32>
    %239 = arith.addf %236, %238 : vector<8x512xf32>
    %240 = vector.extract_strided_slice %239 {offsets = [0, 0], sizes = [8, 128], strides = [1, 1]} : vector<8x512xf32> to vector<8x128xf32>
    %241 = arith.negf %240 : vector<8x128xf32>
    %242 = math.exp %241 : vector<8x128xf32>
    %cst_69 = arith.constant 1.000000e+00 : f32
    %243 = vector.broadcast %cst_69 : f32 to vector<8x128xf32>
    %244 = arith.addf %243, %242 : vector<8x128xf32>
    %245 = arith.divf %243, %244 : vector<8x128xf32>
    %246 = vector.extract_strided_slice %239 {offsets = [0, 128], sizes = [8, 128], strides = [1, 1]} : vector<8x512xf32> to vector<8x128xf32>
    %247 = arith.negf %246 : vector<8x128xf32>
    %248 = math.exp %247 : vector<8x128xf32>
    %cst_70 = arith.constant 1.000000e+00 : f32
    %249 = vector.broadcast %cst_70 : f32 to vector<8x128xf32>
    %250 = arith.addf %249, %248 : vector<8x128xf32>
    %251 = arith.divf %249, %250 : vector<8x128xf32>
    %252 = vector.extract_strided_slice %239 {offsets = [0, 256], sizes = [8, 128], strides = [1, 1]} : vector<8x512xf32> to vector<8x128xf32>
    %253 = math.tanh %252 : vector<8x128xf32>
    %254 = vector.extract_strided_slice %239 {offsets = [0, 384], sizes = [8, 128], strides = [1, 1]} : vector<8x512xf32> to vector<8x128xf32>
    %255 = arith.negf %254 : vector<8x128xf32>
    %256 = math.exp %255 : vector<8x128xf32>
    %cst_71 = arith.constant 1.000000e+00 : f32
    %257 = vector.broadcast %cst_71 : f32 to vector<8x128xf32>
    %258 = arith.addf %257, %256 : vector<8x128xf32>
    %259 = arith.divf %257, %258 : vector<8x128xf32>
    %260 = arith.mulf %251, %230 : vector<8x128xf32>
    %261 = arith.mulf %245, %253 : vector<8x128xf32>
    %262 = arith.addf %260, %261 : vector<8x128xf32>
    %263 = math.tanh %262 : vector<8x128xf32>
    %264 = arith.mulf %259, %263 : vector<8x128xf32>
    %c8_i32_72 = arith.constant 8 : i32
    %c0_73 = arith.constant 0 : index
    %c0_74 = arith.constant 0 : index
    %265 = vector.load %arg4[%c0_73, %c0_74] : memref<1x128xf32, #tpu.memory_space<vmem>>, vector<1x128xf32>
    %266 = vector.broadcast %265 : vector<1x128xf32> to vector<8x128xf32>
    %267 = arith.mulf %264, %266 : vector<8x128xf32>
    %cst_75 = arith.constant dense<0.000000e+00> : vector<8xf32>
    %268 = vector.multi_reduction <add>, %267, %cst_75 [1] : vector<8x128xf32> to vector<8xf32>
    %269 = vector.shape_cast %268 : vector<8xf32> to vector<8x1xf32>
    %c0_76 = arith.constant 0 : index
    %c0_77 = arith.constant 0 : index
    %270 = vector.load %arg5[%c0_76, %c0_77] : memref<1x1xf32, #tpu.memory_space<vmem>>, vector<1x1xf32>
    %271 = vector.broadcast %270 : vector<1x1xf32> to vector<8x1xf32>
    %272 = arith.addf %269, %271 : vector<8x1xf32>
    %273 = vector.shape_cast %272 : vector<8x1xf32> to vector<8x1xf32>
    %274 = vector.broadcast %273 : vector<8x1xf32> to vector<8x128xf32>
    %c0_78 = arith.constant 0 : index
    %c0_79 = arith.constant 0 : index
    %275 = vector.load %arg6[%c0_78, %c0_79] : memref<8x128xf32, #tpu.memory_space<vmem>>, vector<8x128xf32>
    tpu.vector_store %arg6[%c0_78, %c0_79], %274 {strides = array<i32>} : memref<8x128xf32, #tpu.memory_space<vmem>>, vector<8x128xf32>,
    return
  }
}

</mosaic_0001>

<bundles_post_ra>
// kernel: tpu_custom_call.1
= control target key start
LH: loop header
LB: loop body
LE: loop exit
PB: predicated region body
PF: predicated region fallthrough
CT: control target
= control target key end

     0   :  { %s3234_s0 = inlined_call_operand.vmem [shape: f32[64,16], index: 0, kind: input, shape index: {}]   ;;  %s3235_s1 = inlined_call_operand.vmem [shape: f32[16,512], index: 1, kind: input, shape index: {}]   ;;  %s3236_s2 = inlined_call_operand.hbm [shape: f32[128,512], index: 2, kind: input, shape index: {}]   ;;  %s3237_s3 = inlined_call_operand.vmem [shape: f32[1,512], index: 3, kind: input, shape index: {}]   ;;  %s3238_s4 = inlined_call_operand.vmem [shape: f32[1,128], index: 4, kind: input, shape index: {}]   ;;  %s3239_s5 = inlined_call_operand.<no memory space> [shape: f32[1,1], index: 5, kind: input, shape index: {}]   ;;  %s3240_s6 = inlined_call_operand.hbm [shape: f32[8,128], index: 6, kind: output, shape index: {}]  }
   0x1   :  { %v11_v0 = vstv %s3239_s5 }
   0x2   :  { %12 = vst [vmem:[#allocation3] sm:$0x1] %v11_v0 }
   0x3   :  { %13 = vsyncpa [#allocation5], 0 }
   0x4   :  { %14 = vsyncpa [#allocation6], 0  ;;  %s2172_s23 = smov [#allocation4]  }
   0x5   :  { %s24_s24 = sshll.u32 %s2172_s23, 4  ;;  %s25_s24 = int_to_ptr.vmem [resolvable:$true] %s24_s24 }
   0x6   :  { %s2136_s25 = scalar_lea.vmem %s25_s24, 8192  ;;  %p2141_p1 = scmp.lt.s32.totalorder %s25_s24, %s25_s24 }
   0x7   :  { %p2137_p0 = scmp.ne.s32.totalorder %s25_s24, %s2136_s25  ;;  %p2142_p2 = scmp.lt.s32.totalorder %s2136_s25, %s2136_s25 }
   0x9   :  { %p2143_p3 = por %p2142_p2, %p2141_p1 }
   0xb   :  { %p2144_p4 = pnand %p2143_p3, %p2137_p0 }
   0xd   :  { %2147 = shalt.err (!%p2144_p4)
}
   0xe   :  { %s2173_s26 = smov 512   ;;  %s2174_s27 = smov 32  }
   0xf   :  { %30 = dma.hbm_to_vmem [thread:$0]  %s3236_s2, 8192, %s25_s24, [#allocation5], %s2173_s26, %s2173_s26, %s2174_s27  }
  0x10   :  { %2168 = dma.done.wait [#allocation5], 8192  }
  0x11   :  { %2169 = vsyncadd [#allocation5], 4294959104  ;;  %v3241_v1 = vmov 0.0   ;;  %v53_v2 = vld [vmem:[%s3235_s1 + $0x28] sm:$0xff]  ;;  %v55_v3 = vld [vmem:[%s3235_s1 + $0x38] sm:$0xff]  ;;  %vm78_vm0 = vcmask 130048  }
  0x12   :  { %167 = vmatprep.mubr.f32.mxu0 %v3241_v1  ;;  %280 = vmatprep.mubr.f32.mxu1 %v3241_v1  ;;  %v52_v4 = vld [vmem:[%s3235_s1 + $0x20] sm:$0xff]  ;;  %v54_v5 = vld [vmem:[%s3235_s1 + $0x30] sm:$0xff]  ;;  %v49_v6 = vld [vmem:[%s3235_s1 + $0x8] sm:$0xff]  ;;  %s2177_s11 = smov [#allocation7]  }
  0x13   :  { %131 = vmatprep.subr.mxu0 %v53_v2  ;;  %244 = vmatprep.subr.mxu1 %v55_v3  ;;  %v51_v7 = vld [vmem:[%s3235_s1 + $0x18] sm:$0xff]  ;;  %v48_v8 = vld [vmem:[%s3235_s1] sm:$0xff]  ;;  %v50_v9 = vld [vmem:[%s3235_s1 + $0x10] sm:$0xff]  ;;  %s1871_s12 = sshll.u32 %s2177_s11, 4  ;;  %s1872_s12 = int_to_ptr.vmem [resolvable:$true] %s1871_s12 }
  0x14   :  { %132 = vmatpush1.msra.mxu0 %v52_v4  ;;  %245 = vmatpush1.msra.mxu1 %v54_v5  ;;  %v40_v10 = vld [vmem:[%s3234_s0] sm:$0xff]  ;;  %v2248_v11 = vld [vmem:[#allocation4 + $0x1e8] sm:$0xff]  ;;  %v2254_v14 = vld [vmem:[#allocation4 + $0x1f0] sm:$0xff]  ;;  %s2148_s13 = scalar_lea.vmem %s1872_s12, 128  ;;  %p2153_p6 = scmp.lt.s32.totalorder %s1872_s12, %s1872_s12 }
  0x15   :  { %133 = vmatprep.subr.mxu0 %v49_v6  ;;  %246 = vmatprep.subr.mxu1 %v51_v7  ;;  %3329 = vst [vmem:[#allocation10_spill] sm:$0xff] %v2248_v11  ;;  %v2250_v12 = vld [vmem:[#allocation4 + $0x1f8] sm:$0xff]  ;;  %v2252_v13 = vld [vmem:[#allocation4 + $0x1e0] sm:$0xff]  ;;  %v2258_v15 = vld [vmem:[#allocation4 + $0x1c8] sm:$0xff]  ;;  %p2149_p5 = scmp.ne.s32.totalorder %s1872_s12, %s2148_s13  ;;  %p2154_p7 = scmp.lt.s32.totalorder %s2148_s13, %s2148_s13 }
  0x16   :  { %3330 = vst [vmem:[#allocation11_spill] sm:$0xff] %v2250_v12  ;;  %134 = vmatpush1.msra.mxu0 %v48_v8  ;;  %247 = vmatpush1.msra.mxu1 %v50_v9  ;;  %v2260_v16 = vld [vmem:[#allocation4 + $0x1d8] sm:$0xff]  ;;  %v2266_v17 = vld [vmem:[#allocation4 + $0x1c0] sm:$0xff]  ;;  %v2268_v18 = vld [vmem:[#allocation4 + $0x1d0] sm:$0xff] }
  0x17   :  { %1887 = vmatmul.mubr.msk.f32.vlgmr.msra.gmra.mxu0 %vm78_vm0, %v40_v10  ;;  %1895 = vmatmul.mubr.msk.f32.vlgmr.msra.gmra.mxu1 %vm78_vm0, %v40_v10  ;;  %v41_v19 = vld [vmem:[%s3234_s0 + $0x8] sm:$0xff]  ;;  %v2279_v21 = vld [vmem:[#allocation4 + $0x1b8] sm:$0xff]  ;;  %v2285_v23 = vld [vmem:[#allocation4 + $0x1b0] sm:$0xff]  ;;  %p2155_p8 = por %p2154_p7, %p2153_p6 }
  0x18   :  { %432 = vmatprep.subr.mxu0 %v2248_v11  ;;  %503 = vmatprep.subr.mxu1 %v2250_v12  ;;  %v2277_v20 = vld [vmem:[#allocation4 + $0x1a8] sm:$0xff]  ;;  %v2283_v22 = vld [vmem:[#allocation4 + $0x1a0] sm:$0xff]  ;;  %v2291_v25 = vld [vmem:[#allocation4 + $0x198] sm:$0xff] }
  0x19   :  { %433 = vmatpush1.msra.mxu0 %v2252_v13  ;;  %504 = vmatpush1.msra.mxu1 %v2254_v14  ;;  %v2289_v24 = vld [vmem:[#allocation4 + $0x188] sm:$0xff]  ;;  %v2297_v26 = vld [vmem:[#allocation4 + $0x180] sm:$0xff]  ;;  %v2299_v27 = vld [vmem:[#allocation4 + $0x190] sm:$0xff]  ;;  %p2156_p9 = pnand %p2155_p8, %p2149_p5 }
  0x1a   :  { %434 = vmatprep.subr.mxu0 %v2258_v15  ;;  %505 = vmatprep.subr.mxu1 %v2260_v16  ;;  %v42_v28 = vld [vmem:[%s3234_s0 + $0x10] sm:$0xff]  ;;  %v2310_v30 = vld [vmem:[#allocation4 + $0x178] sm:$0xff]  ;;  %v2314_v31 = vld [vmem:[#allocation4 + $0x160] sm:$0xff] }
  0x1b   :  { %173 = vmatprep.mubr.f32.mxu0 %v3241_v1  ;;  %286 = vmatprep.mubr.f32.mxu1 %v3241_v1  ;;  %v2308_v29 = vld [vmem:[#allocation4 + $0x168] sm:$0xff]  ;;  %v2316_v32 = vld [vmem:[#allocation4 + $0x170] sm:$0xff]  ;;  %v2322_v34 = vld [vmem:[#allocation4 + $0x158] sm:$0xff] }
  0x1c   :  { %435 = vmatpush1.msra.mxu0 %v2266_v17  ;;  %506 = vmatpush1.msra.mxu1 %v2268_v18  ;;  %v2320_v33 = vld [vmem:[#allocation4 + $0x148] sm:$0xff]  ;;  %v2328_v35 = vld [vmem:[#allocation4 + $0x140] sm:$0xff]  ;;  %v2330_v36 = vld [vmem:[#allocation4 + $0x150] sm:$0xff] }
  0x1d   :  { %1888 = vmatmul.mubr.msk.f32.gmra.mxu0 %vm78_vm0, %v41_v19  ;;  %1896 = vmatmul.mubr.msk.f32.gmra.mxu1 %vm78_vm0, %v41_v19  ;;  %v43_v37 = vld [vmem:[%s3234_s0 + $0x18] sm:$0xff]  ;;  %v2339_v38 = vld [vmem:[#allocation4 + $0x128] sm:$0xff]  ;;  %v2345_v40 = vld [vmem:[#allocation4 + $0x120] sm:$0xff] }
  0x1e   :  { %436 = vmatprep.subr.mxu0 %v2277_v20  ;;  %507 = vmatprep.subr.mxu1 %v2279_v21  ;;  %v2341_v39 = vld [vmem:[#allocation4 + $0x138] sm:$0xff]  ;;  %v2347_v41 = vld [vmem:[#allocation4 + $0x130] sm:$0xff]  ;;  %v2351_v42 = vld [vmem:[#allocation4 + $0x108] sm:$0xff] }
  0x1f   :  { %437 = vmatpush1.msra.mxu0 %v2283_v22  ;;  %508 = vmatpush1.msra.mxu1 %v2285_v23  ;;  %v2353_v43 = vld [vmem:[#allocation4 + $0x118] sm:$0xff]  ;;  %v2359_v44 = vld [vmem:[#allocation4 + $0x100] sm:$0xff]  ;;  %v2361_v45 = vld [vmem:[#allocation4 + $0x110] sm:$0xff] }
  0x20   :  { %438 = vmatprep.subr.mxu0 %v2289_v24  ;;  %509 = vmatprep.subr.mxu1 %v2291_v25  ;;  %v44_v46 = vld [vmem:[%s3234_s0 + $0x20] sm:$0xff]  ;;  %v2370_v47 = vld [vmem:[#allocation4 + $0xe8] sm:$0xff]  ;;  %v2378_v50 = vld [vmem:[#allocation4 + $0xf0] sm:$0xff] }
  0x21   :  { %179 = vmatprep.mubr.f32.mxu0 %v3241_v1  ;;  %292 = vmatprep.mubr.f32.mxu1 %v3241_v1  ;;  %v2372_v48 = vld [vmem:[#allocation4 + $0xf8] sm:$0xff]  ;;  %v2376_v49 = vld [vmem:[#allocation4 + $0xe0] sm:$0xff]  ;;  %v2382_v51 = vld [vmem:[#allocation4 + $0xc8] sm:$0xff] }
  0x22   :  { %439 = vmatpush1.msra.mxu0 %v2297_v26  ;;  %510 = vmatpush1.msra.mxu1 %v2299_v27  ;;  %v2384_v52 = vld [vmem:[#allocation4 + $0xd8] sm:$0xff]  ;;  %v2390_v53 = vld [vmem:[#allocation4 + $0xc0] sm:$0xff]  ;;  %v2392_v54 = vld [vmem:[#allocation4 + $0xd0] sm:$0xff] }
  0x23   :  { %1889 = vmatmul.mubr.msk.f32.gmra.mxu0 %vm78_vm0, %v42_v28  ;;  %1897 = vmatmul.mubr.msk.f32.gmra.mxu1 %vm78_vm0, %v42_v28  ;;  %v45_v55 = vld [vmem:[%s3234_s0 + $0x28] sm:$0xff]  ;;  %v2403_v57 = vld [vmem:[#allocation4 + $0xb8] sm:$0xff]  ;;  %v2409_v59 = vld [vmem:[#allocation4 + $0xb0] sm:$0xff] }
  0x24   :  { %440 = vmatprep.subr.mxu0 %v2308_v29  ;;  %511 = vmatprep.subr.mxu1 %v2310_v30  ;;  %v2401_v56 = vld [vmem:[#allocation4 + $0xa8] sm:$0xff]  ;;  %v2407_v58 = vld [vmem:[#allocation4 + $0xa0] sm:$0xff]  ;;  %v2415_v61 = vld [vmem:[#allocation4 + $0x98] sm:$0xff] }
  0x25   :  { %441 = vmatpush1.msra.mxu0 %v2314_v31  ;;  %512 = vmatpush1.msra.mxu1 %v2316_v32  ;;  %v2413_v60 = vld [vmem:[#allocation4 + $0x88] sm:$0xff]  ;;  %3332 = vst [vmem:[#allocation13_spill] sm:$0xff] %v2415_v61  ;;  %v2421_v62 = vld [vmem:[#allocation4 + $0x80] sm:$0xff]  ;;  %v2423_v63 = vld [vmem:[#allocation4 + $0x90] sm:$0xff] }
  0x26   :  { %442 = vmatprep.subr.mxu0 %v2320_v33  ;;  %513 = vmatprep.subr.mxu1 %v2322_v34  ;;  %3331 = vst [vmem:[#allocation12_spill] sm:$0xff] %v2413_v60  ;;  %3333 = vst [vmem:[#allocation14_spill] sm:$0xff] %v2421_v62  ;;  %v46_v0 = vld [vmem:[%s3234_s0 + $0x30] sm:$0xff]  ;;  %v2434_v3 = vld [vmem:[#allocation4 + $0x78] sm:$0xff] }
  0x27   :  { %185 = vmatprep.mubr.f32.mxu0 %v3241_v1  ;;  %298 = vmatprep.mubr.f32.mxu1 %v3241_v1  ;;  %3334 = vst [vmem:[#allocation15_spill] sm:$0xff] %v2423_v63  ;;  %v2432_v2 = vld [vmem:[#allocation4 + $0x68] sm:$0xff]  ;;  %3336 = vst [vmem:[#allocation17_spill] sm:$0xff] %v2434_v3  ;;  %v2438_v4 = vld [vmem:[#allocation4 + $0x60] sm:$0xff] }
  0x28   :  { %443 = vmatpush1.msra.mxu0 %v2328_v35  ;;  %514 = vmatpush1.msra.mxu1 %v2330_v36  ;;  %3335 = vst [vmem:[#allocation16_spill] sm:$0xff] %v2432_v2  ;;  %3337 = vst [vmem:[#allocation18_spill] sm:$0xff] %v2438_v4  ;;  %v2440_v5 = vld [vmem:[#allocation4 + $0x70] sm:$0xff]  ;;  %v2444_v6 = vld [vmem:[#allocation4 + $0x48] sm:$0xff] }
  0x29   :  { %1890 = vmatmul.mubr.msk.f32.gmra.mxu0 %vm78_vm0, %v43_v37  ;;  %1898 = vmatmul.mubr.msk.f32.gmra.mxu1 %vm78_vm0, %v43_v37  ;;  %3338 = vst [vmem:[#allocation19_spill] sm:$0xff] %v2440_v5  ;;  %3339 = vst [vmem:[#allocation20_spill] sm:$0xff] %v2444_v6  ;;  %v2446_v7 = vld [vmem:[#allocation4 + $0x58] sm:$0xff]  ;;  %v2452_v8 = vld [vmem:[#allocation4 + $0x40] sm:$0xff] }
  0x2a   :  { %444 = vmatprep.subr.mxu0 %v2339_v38  ;;  %515 = vmatprep.subr.mxu1 %v2341_v39  ;;  %3340 = vst [vmem:[#allocation21_spill] sm:$0xff] %v2446_v7  ;;  %3341 = vst [vmem:[#allocation22_spill] sm:$0xff] %v2452_v8  ;;  %v2454_v9 = vld [vmem:[#allocation4 + $0x50] sm:$0xff]  ;;  %v2463_v19 = vld [vmem:[#allocation4 + $0x28] sm:$0xff] }
  0x2b   :  { %445 = vmatpush1.msra.mxu0 %v2345_v40  ;;  %516 = vmatpush1.msra.mxu1 %v2347_v41  ;;  %3342 = vst [vmem:[#allocation23_spill] sm:$0xff] %v2454_v9  ;;  %v47_v10 = vld [vmem:[%s3234_s0 + $0x38] sm:$0xff]  ;;  %3343 = vst [vmem:[#allocation24_spill] sm:$0xff] %v2463_v19  ;;  %v2469_v37 = vld [vmem:[#allocation4 + $0x20] sm:$0xff] }
  0x2c   :  { %446 = vmatprep.subr.mxu0 %v2351_v42  ;;  %517 = vmatprep.subr.mxu1 %v2353_v43  ;;  %v2465_v28 = vld [vmem:[#allocation4 + $0x38] sm:$0xff]  ;;  %3345 = vst [vmem:[#allocation26_spill] sm:$0xff] %v2469_v37 }
  0x2d   :  { %191 = vmatprep.mubr.f32.mxu0 %v3241_v1  ;;  %304 = vmatprep.mubr.f32.mxu1 %v3241_v1  ;;  %3344 = vst [vmem:[#allocation25_spill] sm:$0xff] %v2465_v28 }
  0x2e   :  { %447 = vmatpush1.msra.mxu0 %v2359_v44  ;;  %518 = vmatpush1.msra.mxu1 %v2361_v45 }
  0x2f   :  { %1891 = vmatmul.mubr.msk.f32.gmra.mxu0 %vm78_vm0, %v44_v46  ;;  %1899 = vmatmul.mubr.msk.f32.gmra.mxu1 %vm78_vm0, %v44_v46  ;;  %v2471_v46 = vld [vmem:[#allocation4 + $0x30] sm:$0xff] }
  0x30   :  { %448 = vmatprep.subr.mxu0 %v2370_v47  ;;  %519 = vmatprep.subr.mxu1 %v2372_v48  ;;  %3346 = vst [vmem:[#allocation27_spill] sm:$0xff] %v2471_v46 }
  0x31   :  { %449 = vmatpush1.msra.mxu0 %v2376_v49  ;;  %520 = vmatpush1.msra.mxu1 %v2378_v50 }
  0x32   :  { %450 = vmatprep.subr.mxu0 %v2382_v51  ;;  %521 = vmatprep.subr.mxu1 %v2384_v52 }
  0x33   :  { %197 = vmatprep.mubr.f32.mxu0 %v3241_v1  ;;  %310 = vmatprep.mubr.f32.mxu1 %v3241_v1 }
  0x34   :  { %451 = vmatpush1.msra.mxu0 %v2390_v53  ;;  %522 = vmatpush1.msra.mxu1 %v2392_v54 }
  0x35   :  { %1892 = vmatmul.mubr.msk.f32.gmra.mxu0 %vm78_vm0, %v45_v55  ;;  %1900 = vmatmul.mubr.msk.f32.gmra.mxu1 %vm78_vm0, %v45_v55  ;;  %v2475_v55 = vld [vmem:[#allocation4 + $0x8] sm:$0xff] }
  0x36   :  { %452 = vmatprep.subr.mxu0 %v2401_v56  ;;  %523 = vmatprep.subr.mxu1 %v2403_v57  ;;  %3347 = vst [vmem:[#allocation28_spill] sm:$0xff] %v2475_v55 }
  0x37   :  { %453 = vmatpush1.msra.mxu0 %v2407_v58  ;;  %524 = vmatpush1.msra.mxu1 %v2409_v59 }
  0x38   :  { %454 = vmatprep.subr.mxu0 %v2413_v60  ;;  %525 = vmatprep.subr.mxu1 %v2415_v61 }
  0x39   :  { %203 = vmatprep.mubr.f32.mxu0 %v3241_v1  ;;  %316 = vmatprep.mubr.f32.mxu1 %v3241_v1 }
  0x3a   :  { %455 = vmatpush1.msra.mxu0 %v2421_v62  ;;  %526 = vmatpush1.msra.mxu1 %v2423_v63 }
  0x3b   :  { %1893 = vmatmul.mubr.msk.f32.gmra.mxu0 %vm78_vm0, %v46_v0  ;;  %1901 = vmatmul.mubr.msk.f32.gmra.mxu1 %vm78_vm0, %v46_v0  ;;  %v2477_v0 = vld [vmem:[#allocation4 + $0x18] sm:$0xff] }
  0x3c   :  { %456 = vmatprep.subr.mxu0 %v2432_v2  ;;  %527 = vmatprep.subr.mxu1 %v2434_v3  ;;  %3348 = vst [vmem:[#allocation29_spill] sm:$0xff] %v2477_v0 }
  0x3d   :  { %457 = vmatpush1.msra.mxu0 %v2438_v4  ;;  %528 = vmatpush1.msra.mxu1 %v2440_v5 }
  0x3e   :  { %458 = vmatprep.subr.mxu0 %v2444_v6  ;;  %529 = vmatprep.subr.mxu1 %v2446_v7 }
  0x3f   :  { %209 = vmatprep.mubr.f32.mxu0 %v3241_v1  ;;  %322 = vmatprep.mubr.f32.mxu1 %v3241_v1  ;;  %v2481_v1 = vld [vmem:[#allocation4] sm:$0xff] }
  0x40   :  { %459 = vmatpush1.msra.mxu0 %v2452_v8  ;;  %530 = vmatpush1.msra.mxu1 %v2454_v9  ;;  %3349 = vst [vmem:[#allocation30_spill] sm:$0xff] %v2481_v1  ;;  %v2485_v9 = vld [vmem:[#allocation4 + $0x10] sm:$0xff] }
  0x41   :  { %1894 = vmatmul.mubr.msk.f32.gmra.mxu0 %vm78_vm0, %v47_v10  ;;  %1902 = vmatmul.mubr.msk.f32.gmra.mxu1 %vm78_vm0, %v47_v10  ;;  %3350 = vst [vmem:[#allocation31_spill] sm:$0xff] %v2485_v9  ;;  %v3351_v10 = vmov 0.0  }
  0x42   :  { %460 = vmatprep.subr.mxu0 %v2463_v19  ;;  %531 = vmatprep.subr.mxu1 %v2465_v28 }
  0x43   :  { %461 = vmatpush1.msra.mxu0 %v2469_v37  ;;  %532 = vmatpush1.msra.mxu1 %v2471_v46 }
  0x44   :  { %462 = vmatprep.subr.mxu0 %v2475_v55  ;;  %533 = vmatprep.subr.mxu1 %v2477_v0 }
  0x45   :  { %463 = vmatpush1.msra.mxu0 %v2481_v1  ;;  %496 = vmatprep.mubr.f32.mxu0 %v3351_v10 }
  0x46   :  { %534 = vmatpush1.msra.mxu1 %v2485_v9  ;;  %567 = vmatprep.mubr.f32.mxu1 %v3351_v10 }
  0x47   :  { %497 = vmatmul.mubr.f32.vlgmr.msra.gmra.mxu0 %v3351_v10  ;;  %568 = vmatmul.mubr.f32.vlgmr.msra.gmra.mxu1 %v3351_v10 }
  0x48   :  { %609 = vmatprep.subr.mxu0 %v2248_v11  ;;  %680 = vmatprep.subr.mxu1 %v2250_v12 }
  0x49   :  { %610 = vmatpush1.msra.mxu0 %v2252_v13  ;;  %681 = vmatpush1.msra.mxu1 %v2254_v14 }
  0x4a   :  { %611 = vmatprep.subr.mxu0 %v2258_v15  ;;  %682 = vmatprep.subr.mxu1 %v2260_v16 }
  0x4b   :  { %612 = vmatpush1.msra.mxu0 %v2266_v17  ;;  %683 = vmatpush1.msra.mxu1 %v2268_v18 }
  0x4c   :  { %613 = vmatprep.subr.mxu0 %v2277_v20  ;;  %684 = vmatprep.subr.mxu1 %v2279_v21 }
  0x4d   :  { %614 = vmatpush1.msra.mxu0 %v2283_v22  ;;  %685 = vmatpush1.msra.mxu1 %v2285_v23 }
  0x4e   :  { %615 = vmatprep.subr.mxu0 %v2289_v24  ;;  %686 = vmatprep.subr.mxu1 %v2291_v25 }
  0x4f   :  { %616 = vmatpush1.msra.mxu0 %v2297_v26  ;;  %687 = vmatpush1.msra.mxu1 %v2299_v27 }
  0x50   :  { %617 = vmatprep.subr.mxu0 %v2308_v29  ;;  %688 = vmatprep.subr.mxu1 %v2310_v30 }
  0x51   :  { %618 = vmatpush1.msra.mxu0 %v2314_v31  ;;  %689 = vmatpush1.msra.mxu1 %v2316_v32 }
  0x52   :  { %619 = vmatprep.subr.mxu0 %v2320_v33  ;;  %690 = vmatprep.subr.mxu1 %v2322_v34 }
  0x53   :  { %620 = vmatpush1.msra.mxu0 %v2328_v35  ;;  %691 = vmatpush1.msra.mxu1 %v2330_v36 }
  0x54   :  { %621 = vmatprep.subr.mxu0 %v2339_v38  ;;  %692 = vmatprep.subr.mxu1 %v2341_v39 }
  0x55   :  { %622 = vmatpush1.msra.mxu0 %v2345_v40  ;;  %693 = vmatpush1.msra.mxu1 %v2347_v41 }
  0x56   :  { %623 = vmatprep.subr.mxu0 %v2351_v42  ;;  %694 = vmatprep.subr.mxu1 %v2353_v43 }
  0x57   :  { %624 = vmatpush1.msra.mxu0 %v2359_v44  ;;  %695 = vmatpush1.msra.mxu1 %v2361_v45 }
  0x58   :  { %625 = vmatprep.subr.mxu0 %v2370_v47  ;;  %696 = vmatprep.subr.mxu1 %v2372_v48 }
  0x59   :  { %626 = vmatpush1.msra.mxu0 %v2376_v49  ;;  %697 = vmatpush1.msra.mxu1 %v2378_v50 }
  0x5a   :  { %627 = vmatprep.subr.mxu0 %v2382_v51  ;;  %698 = vmatprep.subr.mxu1 %v2384_v52 }
  0x5b   :  { %628 = vmatpush1.msra.mxu0 %v2390_v53  ;;  %699 = vmatpush1.msra.mxu1 %v2392_v54 }
  0x5c   :  { %629 = vmatprep.subr.mxu0 %v2401_v56  ;;  %700 = vmatprep.subr.mxu1 %v2403_v57 }
  0x5d   :  { %630 = vmatpush1.msra.mxu0 %v2407_v58  ;;  %701 = vmatpush1.msra.mxu1 %v2409_v59 }
  0x5e   :  { %631 = vmatprep.subr.mxu0 %v2413_v60  ;;  %702 = vmatprep.subr.mxu1 %v2415_v61  ;;  %v3352_v60 = vld [vmem:[#allocation23_spill] sm:$0xff] }
  0x5f   :  { %632 = vmatpush1.msra.mxu0 %v2421_v62  ;;  %703 = vmatpush1.msra.mxu1 %v2423_v63 }
  0x60   :  { %633 = vmatprep.subr.mxu0 %v2432_v2  ;;  %704 = vmatprep.subr.mxu1 %v2434_v3 }
  0x61   :  { %634 = vmatpush1.msra.mxu0 %v2438_v4  ;;  %705 = vmatpush1.msra.mxu1 %v2440_v5 }
  0x62   :  { %635 = vmatprep.subr.mxu0 %v2444_v6  ;;  %706 = vmatprep.subr.mxu1 %v2446_v7 }
  0x63   :  { %636 = vmatpush1.msra.mxu0 %v2452_v8  ;;  %707 = vmatpush1.msra.mxu1 %v3352_v60 }
  0x64   :  { %637 = vmatprep.subr.mxu0 %v2463_v19  ;;  %708 = vmatprep.subr.mxu1 %v2465_v28  ;;  %v58_v28 = vlaneseq }
  0x65   :  { %638 = vmatpush1.msra.mxu0 %v2469_v37  ;;  %709 = vmatpush1.msra.mxu1 %v2471_v46 }
  0x66   :  { %639 = vmatprep.subr.mxu0 %v2475_v55  ;;  %710 = vmatprep.subr.mxu1 %v2477_v0  ;;  %v59_v37 = vshrl.u32 %v58_v28, 7 }
  0x67   :  { %640 = vmatpush1.msra.mxu0 %v2481_v1  ;;  %673 = vmatprep.mubr.f32.mxu0 %v3351_v10  ;;  %v56_v1 = vld [vmem:[%s3237_s3] sm:$0xf] }
  0x68   :  { %711 = vmatpush1.msra.mxu1 %v2485_v9  ;;  %744 = vmatprep.mubr.f32.mxu1 %v3351_v10  ;;  %v60_v55 = vsub.s32 0, %v59_v37  ;;  %v68_v0 = vsub.s32 2, %v59_v37  ;;  %v64_v10 = vsub.s32 1, %v59_v37 }
  0x69   :  { %786 = vmatprep.subr.mxu0 %v2248_v11  ;;  %857 = vmatprep.subr.mxu1 %v2250_v12  ;;  %v72_v11 = vsub.s32 3, %v59_v37 }
  0x6a   :  { %v61_v8 = vrot.slane %v56_v1, %v60_v55  ;;  %v2574_v12 = vrot.slane %v56_v1, %v68_v0  ;;  %v65_v6 = vrot.slane %v56_v1, %v64_v10 }
  0x6b   :  { %v2576_v5 = vrot.slane %v56_v1, %v72_v11 }
  0xd7   :  { %v2563_v19 = vpop.f32.mrf.mxu0  ;;  %v2565_v46 = vpop.f32.mrf.mxu1 }
  0xd9   :  { %v2570_v60 = vpop.f32.mrf.mxu0  ;;  %v2572_v9 = vpop.f32.mrf.mxu1 }
  0xdd   :  { %v175_v28 = vpop.f32.mrf.mxu0  ;;  %v288_v7 = vpop.f32.mrf.mxu1 }
  0xde   :  { %v2578_v4 = vadd.f32 %v175_v28, %v61_v8  ;;  %v2581_v3 = vadd.f32 %v288_v7, %v2574_v12 }
  0xdf   :  { %v177_v2 = vpop.f32.mrf.mxu0  ;;  %v290_v63 = vpop.f32.mrf.mxu1 }
  0xe0   :  { %3353 = vst [vmem:[#allocation32_spill] sm:$0xff] %v2578_v4  ;;  %3354 = vst [vmem:[#allocation33_spill] sm:$0xff] %v2581_v3  ;;  %v2583_v62 = vadd.f32 %v177_v2, %v65_v6  ;;  %v2586_v61 = vadd.f32 %v290_v63, %v2576_v5 }
  0xe2   :  { %3355 = vst [vmem:[#allocation34_spill] sm:$0xff] %v2583_v62  ;;  %3356 = vst [vmem:[#allocation35_spill] sm:$0xff] %v2586_v61 }
  0xe3   :  { %v181_v37 = vpop.f32.mrf.mxu0  ;;  %v294_v55 = vpop.f32.mrf.mxu1 }
  0xe4   :  { %v2588_v0 = vadd.f32 %v181_v37, %v61_v8  ;;  %v2591_v10 = vadd.f32 %v294_v55, %v2574_v12 }
  0xe5   :  { %v183_v1 = vpop.f32.mrf.mxu0  ;;  %v296_v11 = vpop.f32.mrf.mxu1 }
  0xe6   :  { %3357 = vst [vmem:[#allocation36_spill] sm:$0xff] %v2588_v0  ;;  %3358 = vst [vmem:[#allocation37_spill] sm:$0xff] %v2591_v10  ;;  %v2593_v28 = vadd.f32 %v183_v1, %v65_v6  ;;  %v2596_v7 = vadd.f32 %v296_v11, %v2576_v5 }
  0xe8   :  { %3359 = vst [vmem:[#allocation38_spill] sm:$0xff] %v2593_v28  ;;  %3360 = vst [vmem:[#allocation39_spill] sm:$0xff] %v2596_v7 }
  0xe9   :  { %v187_v3 = vpop.f32.mrf.mxu0  ;;  %v300_v2 = vpop.f32.mrf.mxu1 }
  0xea   :  { %v2598_v62 = vadd.f32 %v187_v3, %v61_v8  ;;  %v2601_v63 = vadd.f32 %v300_v2, %v2574_v12 }
  0xeb   :  { %v189_v61 = vpop.f32.mrf.mxu0  ;;  %v302_v37 = vpop.f32.mrf.mxu1 }
  0xec   :  { %3361 = vst [vmem:[#allocation40_spill] sm:$0xff] %v2598_v62  ;;  %3362 = vst [vmem:[#allocation41_spill] sm:$0xff] %v2601_v63  ;;  %v2603_v0 = vadd.f32 %v189_v61, %v65_v6  ;;  %v2606_v55 = vadd.f32 %v302_v37, %v2576_v5 }
  0xee   :  { %3363 = vst [vmem:[#allocation42_spill] sm:$0xff] %v2603_v0  ;;  %3364 = vst [vmem:[#allocation43_spill] sm:$0xff] %v2606_v55 }
  0xef   :  { %v193_v10 = vpop.f32.mrf.mxu0  ;;  %v306_v1 = vpop.f32.mrf.mxu1 }
  0xf0   :  { %v2608_v28 = vadd.f32 %v193_v10, %v61_v8  ;;  %v2611_v11 = vadd.f32 %v306_v1, %v2574_v12 }
  0xf1   :  { %v195_v7 = vpop.f32.mrf.mxu0  ;;  %v308_v3 = vpop.f32.mrf.mxu1 }
  0xf2   :  { %3365 = vst [vmem:[#allocation44_spill] sm:$0xff] %v2608_v28  ;;  %3366 = vst [vmem:[#allocation45_spill] sm:$0xff] %v2611_v11  ;;  %v2613_v62 = vadd.f32 %v195_v7, %v65_v6  ;;  %v2616_v2 = vadd.f32 %v308_v3, %v2576_v5 }
  0xf4   :  { %3367 = vst [vmem:[#allocation46_spill] sm:$0xff] %v2613_v62  ;;  %3368 = vst [vmem:[#allocation47_spill] sm:$0xff] %v2616_v2 }
  0xf5   :  { %v199_v63 = vpop.f32.mrf.mxu0  ;;  %v312_v61 = vpop.f32.mrf.mxu1 }
  0xf6   :  { %v2618_v0 = vadd.f32 %v199_v63, %v61_v8  ;;  %v2621_v37 = vadd.f32 %v312_v61, %v2574_v12 }
  0xf7   :  { %v201_v55 = vpop.f32.mrf.mxu0  ;;  %v314_v10 = vpop.f32.mrf.mxu1 }
  0xf8   :  { %3369 = vst [vmem:[#allocation48_spill] sm:$0xff] %v2618_v0  ;;  %3370 = vst [vmem:[#allocation49_spill] sm:$0xff] %v2621_v37  ;;  %v2623_v28 = vadd.f32 %v201_v55, %v65_v6  ;;  %v2626_v1 = vadd.f32 %v314_v10, %v2576_v5 }
  0xfa   :  { %3371 = vst [vmem:[#allocation50_spill] sm:$0xff] %v2623_v28  ;;  %3372 = vst [vmem:[#allocation51_spill] sm:$0xff] %v2626_v1 }
  0xfb   :  { %v205_v11 = vpop.f32.mrf.mxu0  ;;  %v318_v7 = vpop.f32.mrf.mxu1 }
  0xfc   :  { %v2628_v62 = vadd.f32 %v205_v11, %v61_v8  ;;  %v2631_v3 = vadd.f32 %v318_v7, %v2574_v12 }
  0xfd   :  { %v207_v2 = vpop.f32.mrf.mxu0  ;;  %v320_v63 = vpop.f32.mrf.mxu1 }
  0xfe   :  { %3373 = vst [vmem:[#allocation52_spill] sm:$0xff] %v2628_v62  ;;  %3374 = vst [vmem:[#allocation53_spill] sm:$0xff] %v2631_v3  ;;  %v2633_v0 = vadd.f32 %v207_v2, %v65_v6  ;;  %v2636_v61 = vadd.f32 %v320_v63, %v2576_v5  ;;  %v170_v2 = vadd.f32 %v2563_v19, %v61_v8 }
  0xff   :  { %v172_v63 = vadd.f32 %v2570_v60, %v65_v6 }
 0x100   :  { %3375 = vst [vmem:[#allocation54_spill] sm:$0xff] %v2633_v0  ;;  %3376 = vst [vmem:[#allocation55_spill] sm:$0xff] %v2636_v61 }
 0x101   :  { %v211_v37 = vpop.f32.mrf.mxu0  ;;  %v324_v55 = vpop.f32.mrf.mxu1 }
 0x102   :  { %v2638_v28 = vadd.f32 %v211_v37, %v61_v8  ;;  %v2641_v10 = vadd.f32 %v324_v55, %v2574_v12 }
 0x103   :  { %v213_v1 = vpop.f32.mrf.mxu0  ;;  %v326_v11 = vpop.f32.mrf.mxu1 }
 0x104   :  { %3377 = vst [vmem:[#allocation56_spill] sm:$0xff] %v2638_v28  ;;  %3378 = vst [vmem:[#allocation57_spill] sm:$0xff] %v2641_v10  ;;  %v2643_v62 = vadd.f32 %v213_v1, %v65_v6  ;;  %v2646_v7 = vadd.f32 %v326_v11, %v2576_v5  ;;  %v285_v1 = vadd.f32 %v2572_v9, %v2576_v5 }
 0x105   :  { %v283_v11 = vadd.f32 %v2565_v46, %v2574_v12 }
 0x106   :  { %3379 = vst [vmem:[#allocation58_spill] sm:$0xff] %v2643_v62  ;;  %3380 = vst [vmem:[#allocation59_spill] sm:$0xff] %v2646_v7 }
 0x107   :  { %v498_v3 = vpop.f32.mrf.mxu0  ;;  %v569_v28 = vpop.f32.mrf.mxu1 }
 0x108   :  { %v574_v61 = vadd.f32 %v498_v3, %v170_v2  ;;  %v576_v7 = vadd.f32 %v569_v28, %v283_v11  ;;  %v3381_v28 = vld [vmem:[#allocation12_spill] sm:$0xff]  ;;  %v3386_v11 = vld [vmem:[#allocation17_spill] sm:$0xff] }
 0x109   :  { %v500_v0 = vpop.f32.mrf.mxu0  ;;  %v571_v10 = vpop.f32.mrf.mxu1 }
 0x10a   :  { %v1903_v4 = vmul.f32 -1.442695, %v574_v61  ;;  %v575_v37 = vadd.f32 %v500_v0, %v172_v63  ;;  %v577_v62 = vadd.f32 %v571_v10, %v285_v1  ;;  %v3385_v1 = vld [vmem:[#allocation16_spill] sm:$0xff] }
 0x10c   :  { %1936 = vpow2.f32 %v1903_v4  ;;  %v1904_v55 = vmul.f32 -1.442695, %v575_v37  ;;  %v1905_v8 = vmul.f32 -1.442695, %v577_v62  ;;  %v3383_v37 = vld [vmem:[#allocation14_spill] sm:$0xff] }
 0x10e   :  { %1938 = vpow2.f32 %v1904_v55  ;;  %v3384_v55 = vld [vmem:[#allocation15_spill] sm:$0xff] }
 0x10f   :  { %1940 = vpow2.f32 %v1905_v8  ;;  %v3387_v8 = vld [vmem:[#allocation18_spill] sm:$0xff] }
 0x119   :  { %v1937_v19 = vpop.eup %1936 }
 0x11a   :  { %v581_v60 = vadd.f32 1.0, %v1937_v19  ;;  %v3388_v19 = vld [vmem:[#allocation19_spill] sm:$0xff] }
 0x11b   :  { %v1939_v6 = vpop.eup %1938 }
 0x11c   :  { %1942 = vrcp.f32 %v581_v60  ;;  %v587_v0 = vadd.f32 1.0, %v1939_v6  ;;  %v1941_v4 = vpop.eup %1940  ;;  %v3389_v60 = vld [vmem:[#allocation20_spill] sm:$0xff]  ;;  %v3390_v6 = vld [vmem:[#allocation21_spill] sm:$0xff] }
 0x11d   :  { %1944 = vtanh.f32 %v576_v7  ;;  %v594_v63 = vadd.f32 1.0, %v1941_v4  ;;  %v3382_v7 = vld [vmem:[#allocation13_spill] sm:$0xff]  ;;  %v3392_v4 = vld [vmem:[#allocation23_spill] sm:$0xff] }
 0x11e   :  { %1946 = vrcp.f32 %v587_v0  ;;  %v3391_v0 = vld [vmem:[#allocation22_spill] sm:$0xff] }
 0x11f   :  { %1948 = vrcp.f32 %v594_v63  ;;  %v3396_v63 = vld [vmem:[#allocation27_spill] sm:$0xff] }
 0x129   :  { %v1943_v3 = vpop.eup %1942 }
 0x12a   :  { %v1945_v61 = vpop.eup %1944 }
 0x12b   :  { %v1947_v2 = vpop.eup %1946  ;;  %v598_v9 = vmul.f32 %v1945_v61, %v1943_v3  ;;  %v3393_v3 = vld [vmem:[#allocation24_spill] sm:$0xff]  ;;  %v3394_v61 = vld [vmem:[#allocation25_spill] sm:$0xff] }
 0x12c   :  { %v597_v5 = vmul.f32 0.0, %v1947_v2  ;;  %v1949_v12 = vpop.eup %1948  ;;  %v3395_v2 = vld [vmem:[#allocation26_spill] sm:$0xff] }
 0x12e   :  { %v2654_v10 = vadd.f32 %v598_v9, %v597_v5  ;;  %v3397_v5 = vld [vmem:[#allocation28_spill] sm:$0xff]  ;;  %v3398_v9 = vld [vmem:[#allocation29_spill] sm:$0xff] }
 0x130   :  { %1950 = vtanh.f32 %v2654_v10 }
 0x13d   :  { %v1951_v62 = vpop.eup %1950 }
 0x13e   :  { %v601_v46 = vmul.f32 %v1951_v62, %v1949_v12  ;;  %v3399_v12 = vld [vmem:[#allocation30_spill] sm:$0xff]  ;;  %v3400_v62 = vmov 0.0  }
 0x140   :  { %674 = vmatmul.mubr.f32.vlgmr.msra.gmra.mxu0 %v601_v46  ;;  %745 = vmatmul.mubr.f32.vlgmr.msra.gmra.mxu1 %v601_v46  ;;  %v3401_v46 = vld [vmem:[#allocation31_spill] sm:$0xff] }
 0x141   :  { %787 = vmatpush1.msra.mxu0 %v2252_v13  ;;  %858 = vmatpush1.msra.mxu1 %v2254_v14 }
 0x142   :  { %788 = vmatprep.subr.mxu0 %v2258_v15  ;;  %859 = vmatprep.subr.mxu1 %v2260_v16 }
 0x143   :  { %789 = vmatpush1.msra.mxu0 %v2266_v17  ;;  %860 = vmatpush1.msra.mxu1 %v2268_v18 }
 0x144   :  { %790 = vmatprep.subr.mxu0 %v2277_v20  ;;  %861 = vmatprep.subr.mxu1 %v2279_v21 }
 0x145   :  { %791 = vmatpush1.msra.mxu0 %v2283_v22  ;;  %862 = vmatpush1.msra.mxu1 %v2285_v23 }
 0x146   :  { %792 = vmatprep.subr.mxu0 %v2289_v24  ;;  %863 = vmatprep.subr.mxu1 %v2291_v25 }
 0x147   :  { %793 = vmatpush1.msra.mxu0 %v2297_v26  ;;  %864 = vmatpush1.msra.mxu1 %v2299_v27 }
 0x148   :  { %794 = vmatprep.subr.mxu0 %v2308_v29  ;;  %865 = vmatprep.subr.mxu1 %v2310_v30 }
 0x149   :  { %795 = vmatpush1.msra.mxu0 %v2314_v31  ;;  %866 = vmatpush1.msra.mxu1 %v2316_v32 }
 0x14a   :  { %796 = vmatprep.subr.mxu0 %v2320_v33  ;;  %867 = vmatprep.subr.mxu1 %v2322_v34 }
 0x14b   :  { %797 = vmatpush1.msra.mxu0 %v2328_v35  ;;  %868 = vmatpush1.msra.mxu1 %v2330_v36 }
 0x14c   :  { %798 = vmatprep.subr.mxu0 %v2339_v38  ;;  %869 = vmatprep.subr.mxu1 %v2341_v39 }
 0x14d   :  { %799 = vmatpush1.msra.mxu0 %v2345_v40  ;;  %870 = vmatpush1.msra.mxu1 %v2347_v41 }
 0x14e   :  { %800 = vmatprep.subr.mxu0 %v2351_v42  ;;  %871 = vmatprep.subr.mxu1 %v2353_v43 }
 0x14f   :  { %801 = vmatpush1.msra.mxu0 %v2359_v44  ;;  %872 = vmatpush1.msra.mxu1 %v2361_v45 }
 0x150   :  { %802 = vmatprep.subr.mxu0 %v2370_v47  ;;  %873 = vmatprep.subr.mxu1 %v2372_v48 }
 0x151   :  { %803 = vmatpush1.msra.mxu0 %v2376_v49  ;;  %874 = vmatpush1.msra.mxu1 %v2378_v50 }
 0x152   :  { %804 = vmatprep.subr.mxu0 %v2382_v51  ;;  %875 = vmatprep.subr.mxu1 %v2384_v52 }
 0x153   :  { %805 = vmatpush1.msra.mxu0 %v2390_v53  ;;  %876 = vmatpush1.msra.mxu1 %v2392_v54 }
 0x154   :  { %806 = vmatprep.subr.mxu0 %v2401_v56  ;;  %877 = vmatprep.subr.mxu1 %v2403_v57 }
 0x155   :  { %807 = vmatpush1.msra.mxu0 %v2407_v58  ;;  %878 = vmatpush1.msra.mxu1 %v2409_v59 }
 0x156   :  { %808 = vmatprep.subr.mxu0 %v3381_v28  ;;  %879 = vmatprep.subr.mxu1 %v3382_v7 }
 0x157   :  { %809 = vmatpush1.msra.mxu0 %v3383_v37  ;;  %880 = vmatpush1.msra.mxu1 %v3384_v55 }
 0x158   :  { %810 = vmatprep.subr.mxu0 %v3385_v1  ;;  %881 = vmatprep.subr.mxu1 %v3386_v11  ;;  %v3407_v11 = vld [vmem:[#allocation33_spill] sm:$0xff] }
 0x159   :  { %811 = vmatpush1.msra.mxu0 %v3387_v8  ;;  %882 = vmatpush1.msra.mxu1 %v3388_v19  ;;  %v3406_v8 = vld [vmem:[#allocation35_spill] sm:$0xff] }
 0x15a   :  { %812 = vmatprep.subr.mxu0 %v3389_v60  ;;  %883 = vmatprep.subr.mxu1 %v3390_v6 }
 0x15b   :  { %813 = vmatpush1.msra.mxu0 %v3391_v0  ;;  %884 = vmatpush1.msra.mxu1 %v3392_v4  ;;  %v3402_v4 = vld [vmem:[#allocation10_spill] sm:$0xff] }
 0x15c   :  { %814 = vmatprep.subr.mxu0 %v3393_v3  ;;  %885 = vmatprep.subr.mxu1 %v3394_v61  ;;  %v3403_v3 = vld [vmem:[#allocation11_spill] sm:$0xff] }
 0x15d   :  { %815 = vmatpush1.msra.mxu0 %v3395_v2  ;;  %886 = vmatpush1.msra.mxu1 %v3396_v63  ;;  %v3404_v2 = vld [vmem:[#allocation32_spill] sm:$0xff] }
 0x15e   :  { %816 = vmatprep.subr.mxu0 %v3397_v5  ;;  %887 = vmatprep.subr.mxu1 %v3398_v9  ;;  %v3405_v5 = vld [vmem:[#allocation34_spill] sm:$0xff] }
 0x15f   :  { %817 = vmatpush1.msra.mxu0 %v3399_v12  ;;  %850 = vmatprep.mubr.f32.mxu0 %v3400_v62 }
 0x160   :  { %888 = vmatpush1.msra.mxu1 %v3401_v46  ;;  %921 = vmatprep.mubr.f32.mxu1 %v3400_v62 }
 0x161   :  { %963 = vmatprep.subr.mxu0 %v3402_v4  ;;  %1034 = vmatprep.subr.mxu1 %v3403_v3 }
 0x200   :  { %v675_v61 = vpop.f32.mrf.mxu0  ;;  %v746_v9 = vpop.f32.mrf.mxu1 }
 0x201   :  { %v751_v0 = vadd.f32 %v675_v61, %v3404_v2  ;;  %v753_v62 = vadd.f32 %v746_v9, %v3407_v11 }
 0x202   :  { %v677_v63 = vpop.f32.mrf.mxu0  ;;  %v748_v19 = vpop.f32.mrf.mxu1 }
 0x203   :  { %v1906_v6 = vmul.f32 -1.442695, %v751_v0  ;;  %v752_v60 = vadd.f32 %v677_v63, %v3405_v5  ;;  %v754_v46 = vadd.f32 %v748_v19, %v3406_v8 }
 0x205   :  { %1952 = vpow2.f32 %v1906_v6  ;;  %v1907_v12 = vmul.f32 -1.442695, %v752_v60  ;;  %v1908_v1 = vmul.f32 -1.442695, %v754_v46 }
 0x207   :  { %1954 = vpow2.f32 %v1907_v12 }
 0x208   :  { %1956 = vtanh.f32 %v753_v62 }
 0x209   :  { %1958 = vpow2.f32 %v1908_v1 }
 0x212   :  { %v1953_v4 = vpop.eup %1952 }
 0x213   :  { %v758_v55 = vadd.f32 1.0, %v1953_v4 }
 0x214   :  { %v1955_v3 = vpop.eup %1954 }
 0x215   :  { %1960 = vrcp.f32 %v758_v55  ;;  %v764_v61 = vadd.f32 1.0, %v1955_v3  ;;  %v1957_v0 = vpop.eup %1956  ;;  %v3429_v55 = vld [vmem:[#allocation38_spill] sm:$0xff]  ;;  %v3430_v3 = vld [vmem:[#allocation39_spill] sm:$0xff] }
 0x216   :  { %v1959_v2 = vpop.eup %1958 }
 0x217   :  { %1962 = vrcp.f32 %v764_v61  ;;  %v771_v5 = vadd.f32 1.0, %v1959_v2 }
 0x219   :  { %1964 = vrcp.f32 %v771_v5 }
 0x222   :  { %v1961_v6 = vpop.eup %1960 }
 0x223   :  { %v775_v63 = vmul.f32 %v1961_v6, %v1957_v0  ;;  %v3431_v0 = vld [vmem:[#allocation37_spill] sm:$0xff] }
 0x224   :  { %v1963_v60 = vpop.eup %1962 }
 0x225   :  { %v774_v12 = vmul.f32 %v1963_v60, %v2654_v10 }
 0x226   :  { %v1965_v11 = vpop.eup %1964 }
 0x227   :  { %v2728_v8 = vadd.f32 %v775_v63, %v774_v12 }
 0x229   :  { %1966 = vtanh.f32 %v2728_v8 }
 0x236   :  { %v1967_v19 = vpop.eup %1966 }
 0x237   :  { %v778_v9 = vmul.f32 %v1967_v19, %v1965_v11 }
 0x239   :  { %851 = vmatmul.mubr.f32.vlgmr.msra.gmra.mxu0 %v778_v9  ;;  %922 = vmatmul.mubr.f32.vlgmr.msra.gmra.mxu1 %v778_v9 }
 0x23a   :  { %964 = vmatpush1.msra.mxu0 %v2252_v13  ;;  %1035 = vmatpush1.msra.mxu1 %v2254_v14  ;;  %v3408_v13 = vld [vmem:[#allocation15_spill] sm:$0xff]  ;;  %v3409_v14 = vld [vmem:[#allocation16_spill] sm:$0xff] }
 0x23b   :  { %965 = vmatprep.subr.mxu0 %v2258_v15  ;;  %1036 = vmatprep.subr.mxu1 %v2260_v16  ;;  %v3410_v15 = vld [vmem:[#allocation17_spill] sm:$0xff]  ;;  %v3411_v16 = vld [vmem:[#allocation18_spill] sm:$0xff] }
 0x23c   :  { %966 = vmatpush1.msra.mxu0 %v2266_v17  ;;  %1037 = vmatpush1.msra.mxu1 %v2268_v18  ;;  %v3412_v17 = vld [vmem:[#allocation19_spill] sm:$0xff]  ;;  %v3413_v18 = vld [vmem:[#allocation20_spill] sm:$0xff] }
 0x23d   :  { %967 = vmatprep.subr.mxu0 %v2277_v20  ;;  %1038 = vmatprep.subr.mxu1 %v2279_v21  ;;  %v3414_v20 = vld [vmem:[#allocation21_spill] sm:$0xff]  ;;  %v3415_v21 = vld [vmem:[#allocation22_spill] sm:$0xff] }
 0x23e   :  { %968 = vmatpush1.msra.mxu0 %v2283_v22  ;;  %1039 = vmatpush1.msra.mxu1 %v2285_v23  ;;  %v3416_v22 = vld [vmem:[#allocation23_spill] sm:$0xff]  ;;  %v3417_v23 = vld [vmem:[#allocation24_spill] sm:$0xff] }
 0x23f   :  { %969 = vmatprep.subr.mxu0 %v2289_v24  ;;  %1040 = vmatprep.subr.mxu1 %v2291_v25  ;;  %v3418_v24 = vld [vmem:[#allocation25_spill] sm:$0xff]  ;;  %v3419_v25 = vld [vmem:[#allocation26_spill] sm:$0xff] }
 0x240   :  { %970 = vmatpush1.msra.mxu0 %v2297_v26  ;;  %1041 = vmatpush1.msra.mxu1 %v2299_v27  ;;  %v3420_v26 = vld [vmem:[#allocation27_spill] sm:$0xff]  ;;  %v3421_v27 = vld [vmem:[#allocation28_spill] sm:$0xff] }
 0x241   :  { %971 = vmatprep.subr.mxu0 %v2308_v29  ;;  %1042 = vmatprep.subr.mxu1 %v2310_v30  ;;  %v3422_v29 = vld [vmem:[#allocation29_spill] sm:$0xff]  ;;  %v3423_v30 = vld [vmem:[#allocation30_spill] sm:$0xff] }
 0x242   :  { %972 = vmatpush1.msra.mxu0 %v2314_v31  ;;  %1043 = vmatpush1.msra.mxu1 %v2316_v32  ;;  %v3424_v31 = vmov 0.0   ;;  %v3425_v32 = vld [vmem:[#allocation31_spill] sm:$0xff] }
 0x243   :  { %973 = vmatprep.subr.mxu0 %v2320_v33  ;;  %1044 = vmatprep.subr.mxu1 %v2322_v34  ;;  %v2795_v33 = vld [vmem:[#allocation4 + $0x1e8] sm:$0xff]  ;;  %v2798_v34 = vld [vmem:[#allocation4 + $0x1f8] sm:$0xff] }
 0x244   :  { %974 = vmatpush1.msra.mxu0 %v2328_v35  ;;  %1045 = vmatpush1.msra.mxu1 %v2330_v36  ;;  %3426 = vst [vmem:[#allocation12_spill] sm:$0xff] %v2795_v33  ;;  %3427 = vst [vmem:[#allocation13_spill] sm:$0xff] %v2798_v34  ;;  %v3428_v36 = vld [vmem:[#allocation36_spill] sm:$0xff] }
 0x245   :  { %975 = vmatprep.subr.mxu0 %v2339_v38  ;;  %1046 = vmatprep.subr.mxu1 %v2341_v39 }
 0x246   :  { %976 = vmatpush1.msra.mxu0 %v2345_v40  ;;  %1047 = vmatpush1.msra.mxu1 %v2347_v41 }
 0x247   :  { %977 = vmatprep.subr.mxu0 %v2351_v42  ;;  %1048 = vmatprep.subr.mxu1 %v2353_v43 }
 0x248   :  { %978 = vmatpush1.msra.mxu0 %v2359_v44  ;;  %1049 = vmatpush1.msra.mxu1 %v2361_v45 }
 0x249   :  { %979 = vmatprep.subr.mxu0 %v2370_v47  ;;  %1050 = vmatprep.subr.mxu1 %v2372_v48 }
 0x24a   :  { %980 = vmatpush1.msra.mxu0 %v2376_v49  ;;  %1051 = vmatpush1.msra.mxu1 %v2378_v50 }
 0x24b   :  { %981 = vmatprep.subr.mxu0 %v2382_v51  ;;  %1052 = vmatprep.subr.mxu1 %v2384_v52 }
 0x24c   :  { %982 = vmatpush1.msra.mxu0 %v2390_v53  ;;  %1053 = vmatpush1.msra.mxu1 %v2392_v54 }
 0x24d   :  { %983 = vmatprep.subr.mxu0 %v2401_v56  ;;  %1054 = vmatprep.subr.mxu1 %v2403_v57 }
 0x24e   :  { %984 = vmatpush1.msra.mxu0 %v2407_v58  ;;  %1055 = vmatpush1.msra.mxu1 %v2409_v59 }
 0x24f   :  { %985 = vmatprep.subr.mxu0 %v3381_v28  ;;  %1056 = vmatprep.subr.mxu1 %v3382_v7 }
 0x250   :  { %986 = vmatpush1.msra.mxu0 %v3383_v37  ;;  %1057 = vmatpush1.msra.mxu1 %v3408_v13 }
 0x251   :  { %987 = vmatprep.subr.mxu0 %v3409_v14  ;;  %1058 = vmatprep.subr.mxu1 %v3410_v15 }
 0x252   :  { %988 = vmatpush1.msra.mxu0 %v3411_v16  ;;  %1059 = vmatpush1.msra.mxu1 %v3412_v17 }
 0x253   :  { %989 = vmatprep.subr.mxu0 %v3413_v18  ;;  %1060 = vmatprep.subr.mxu1 %v3414_v20 }
 0x254   :  { %990 = vmatpush1.msra.mxu0 %v3415_v21  ;;  %1061 = vmatpush1.msra.mxu1 %v3416_v22 }
 0x255   :  { %991 = vmatprep.subr.mxu0 %v3417_v23  ;;  %1062 = vmatprep.subr.mxu1 %v3418_v24 }
 0x256   :  { %992 = vmatpush1.msra.mxu0 %v3419_v25  ;;  %1063 = vmatpush1.msra.mxu1 %v3420_v26 }
 0x257   :  { %993 = vmatprep.subr.mxu0 %v3421_v27  ;;  %1064 = vmatprep.subr.mxu1 %v3422_v29 }
 0x258   :  { %994 = vmatpush1.msra.mxu0 %v3423_v30  ;;  %1027 = vmatprep.mubr.f32.mxu0 %v3424_v31 }
 0x259   :  { %1065 = vmatpush1.msra.mxu1 %v3425_v32  ;;  %1098 = vmatprep.mubr.f32.mxu1 %v3424_v31 }
 0x25a   :  { %1140 = vmatprep.subr.mxu0 %v2795_v33  ;;  %1211 = vmatprep.subr.mxu1 %v2798_v34 }
 0x2f9   :  { %v852_v35 = vpop.f32.mrf.mxu0  ;;  %v923_v62 = vpop.f32.mrf.mxu1 }
 0x2fa   :  { %v928_v38 = vadd.f32 %v852_v35, %v3428_v36  ;;  %v930_v2 = vadd.f32 %v923_v62, %v3431_v0  ;;  %v2824_v0 = vld [vmem:[#allocation4 + $0x1d0] sm:$0xff] }
 0x2fb   :  { %v854_v39 = vpop.f32.mrf.mxu0  ;;  %v925_v4 = vpop.f32.mrf.mxu1 }
 0x2fc   :  { %v1909_v10 = vmul.f32 -1.442695, %v928_v38  ;;  %v929_v1 = vadd.f32 %v854_v39, %v3429_v55  ;;  %v931_v61 = vadd.f32 %v925_v4, %v3430_v3  ;;  %v2812_v4 = vld [vmem:[#allocation4 + $0x1f0] sm:$0xff]  ;;  %v2815_v3 = vld [vmem:[#allocation4 + $0x1c8] sm:$0xff] }
 0x2fe   :  { %1968 = vpow2.f32 %v1909_v10  ;;  %v1910_v46 = vmul.f32 -1.442695, %v929_v1  ;;  %v1911_v6 = vmul.f32 -1.442695, %v931_v61  ;;  %v2821_v61 = vld [vmem:[#allocation4 + $0x1c0] sm:$0xff] }
 0x300   :  { %1970 = vpow2.f32 %v1910_v46  ;;  %v2809_v46 = vld [vmem:[#allocation4 + $0x1e0] sm:$0xff] }
 0x301   :  { %1972 = vtanh.f32 %v930_v2  ;;  %v2827_v2 = vld [vmem:[#allocation4 + $0x1a8] sm:$0xff] }
 0x302   :  { %1974 = vpow2.f32 %v1911_v6  ;;  %v2830_v6 = vld [vmem:[#allocation4 + $0x1b8] sm:$0xff] }
 0x30b   :  { %v1969_v63 = vpop.eup %1968 }
 0x30c   :  { %v935_v60 = vadd.f32 1.0, %v1969_v63  ;;  %v2833_v63 = vld [vmem:[#allocation4 + $0x1a0] sm:$0xff] }
 0x30d   :  { %v1971_v5 = vpop.eup %1970 }
 0x30e   :  { %1976 = vrcp.f32 %v935_v60  ;;  %v941_v12 = vadd.f32 1.0, %v1971_v5  ;;  %v1973_v11 = vpop.eup %1972  ;;  %v2836_v60 = vld [vmem:[#allocation4 + $0x1b0] sm:$0xff]  ;;  %v2839_v5 = vld [vmem:[#allocation4 + $0x188] sm:$0xff] }
 0x30f   :  { %v1975_v19 = vpop.eup %1974 }
 0x310   :  { %1978 = vrcp.f32 %v941_v12  ;;  %v948_v38 = vadd.f32 1.0, %v1975_v19  ;;  %v2842_v12 = vld [vmem:[#allocation4 + $0x198] sm:$0xff]  ;;  %v2848_v19 = vld [vmem:[#allocation4 + $0x190] sm:$0xff] }
 0x312   :  { %1980 = vrcp.f32 %v948_v38  ;;  %v2860_v38 = vld [vmem:[#allocation4 + $0x170] sm:$0xff] }
 0x313   :  { %3433 = vst [vmem:[#allocation10_spill] sm:$0xff] %v2860_v38 }
 0x31b   :  { %v1977_v9 = vpop.eup %1976 }
 0x31c   :  { %v952_v35 = vmul.f32 %v1977_v9, %v1973_v11  ;;  %v2845_v11 = vld [vmem:[#allocation4 + $0x180] sm:$0xff]  ;;  %v2851_v9 = vld [vmem:[#allocation4 + $0x168] sm:$0xff] }
 0x31d   :  { %v1979_v36 = vpop.eup %1978 }
 0x31e   :  { %v951_v39 = vmul.f32 %v1979_v36, %v2728_v8  ;;  %v2818_v8 = vld [vmem:[#allocation4 + $0x1d8] sm:$0xff]  ;;  %v2857_v36 = vld [vmem:[#allocation4 + $0x160] sm:$0xff] }
 0x31f   :  { %v1981_v55 = vpop.eup %1980  ;;  %3432 = vst [vmem:[#allocation14_spill] sm:$0xff] %v2857_v36 }
 0x320   :  { %v2806_v10 = vadd.f32 %v952_v35, %v951_v39  ;;  %v2854_v35 = vld [vmem:[#allocation4 + $0x178] sm:$0xff]  ;;  %v2863_v39 = vld [vmem:[#allocation4 + $0x148] sm:$0xff] }
 0x322   :  { %1982 = vtanh.f32 %v2806_v10 }
 0x32f   :  { %v1983_v1 = vpop.eup %1982 }
 0x330   :  { %v955_v62 = vmul.f32 %v1983_v1, %v1981_v55  ;;  %v2866_v55 = vld [vmem:[#allocation4 + $0x158] sm:$0xff]  ;;  %v2869_v1 = vld [vmem:[#allocation4 + $0x140] sm:$0xff] }
 0x332   :  { %1028 = vmatmul.mubr.f32.vlgmr.msra.gmra.mxu0 %v955_v62  ;;  %1099 = vmatmul.mubr.f32.vlgmr.msra.gmra.mxu1 %v955_v62  ;;  %v2872_v62 = vld [vmem:[#allocation4 + $0x150] sm:$0xff] }
 0x333   :  { %1141 = vmatpush1.msra.mxu0 %v2809_v46  ;;  %1212 = vmatpush1.msra.mxu1 %v2812_v4 }
 0x334   :  { %1142 = vmatprep.subr.mxu0 %v2815_v3  ;;  %1213 = vmatprep.subr.mxu1 %v2818_v8 }
 0x335   :  { %1143 = vmatpush1.msra.mxu0 %v2821_v61  ;;  %1214 = vmatpush1.msra.mxu1 %v2824_v0 }
 0x336   :  { %1144 = vmatprep.subr.mxu0 %v2827_v2  ;;  %1215 = vmatprep.subr.mxu1 %v2830_v6 }
 0x337   :  { %1145 = vmatpush1.msra.mxu0 %v2833_v63  ;;  %1216 = vmatpush1.msra.mxu1 %v2836_v60 }
 0x338   :  { %1146 = vmatprep.subr.mxu0 %v2839_v5  ;;  %1217 = vmatprep.subr.mxu1 %v2842_v12 }
 0x339   :  { %1147 = vmatpush1.msra.mxu0 %v2845_v11  ;;  %1218 = vmatpush1.msra.mxu1 %v2848_v19 }
 0x33a   :  { %1148 = vmatprep.subr.mxu0 %v2851_v9  ;;  %1219 = vmatprep.subr.mxu1 %v2854_v35 }
 0x33b   :  { %1149 = vmatpush1.msra.mxu0 %v2857_v36  ;;  %1220 = vmatpush1.msra.mxu1 %v2860_v38  ;;  %v2875_v36 = vld [vmem:[#allocation4 + $0x128] sm:$0xff]  ;;  %v2878_v38 = vld [vmem:[#allocation4 + $0x138] sm:$0xff] }
 0x33c   :  { %1150 = vmatprep.subr.mxu0 %v2863_v39  ;;  %1221 = vmatprep.subr.mxu1 %v2866_v55 }
 0x33d   :  { %1151 = vmatpush1.msra.mxu0 %v2869_v1  ;;  %1222 = vmatpush1.msra.mxu1 %v2872_v62 }
 0x33e   :  { %1152 = vmatprep.subr.mxu0 %v2875_v36  ;;  %1223 = vmatprep.subr.mxu1 %v2878_v38 }
 0x33f   :  { %1153 = vmatpush1.msra.mxu0 %v2345_v40  ;;  %1224 = vmatpush1.msra.mxu1 %v2347_v41  ;;  %v3434_v41 = vld [vmem:[#allocation40_spill] sm:$0xff] }
 0x340   :  { %1154 = vmatprep.subr.mxu0 %v2351_v42  ;;  %1225 = vmatprep.subr.mxu1 %v2353_v43 }
 0x341   :  { %1155 = vmatpush1.msra.mxu0 %v2359_v44  ;;  %1226 = vmatpush1.msra.mxu1 %v2361_v45  ;;  %v3435_v45 = vld [vmem:[#allocation42_spill] sm:$0xff] }
 0x342   :  { %1156 = vmatprep.subr.mxu0 %v2370_v47  ;;  %1227 = vmatprep.subr.mxu1 %v2372_v48 }
 0x343   :  { %1157 = vmatpush1.msra.mxu0 %v2376_v49  ;;  %1228 = vmatpush1.msra.mxu1 %v2378_v50 }
 0x344   :  { %1158 = vmatprep.subr.mxu0 %v2382_v51  ;;  %1229 = vmatprep.subr.mxu1 %v2384_v52  ;;  %v3436_v51 = vld [vmem:[#allocation43_spill] sm:$0xff] }
 0x345   :  { %1159 = vmatpush1.msra.mxu0 %v2390_v53  ;;  %1230 = vmatpush1.msra.mxu1 %v2392_v54  ;;  %v3437_v53 = vld [vmem:[#allocation41_spill] sm:$0xff] }
 0x346   :  { %1160 = vmatprep.subr.mxu0 %v2401_v56  ;;  %1231 = vmatprep.subr.mxu1 %v2403_v57 }
 0x347   :  { %1161 = vmatpush1.msra.mxu0 %v2407_v58  ;;  %1232 = vmatpush1.msra.mxu1 %v2409_v59 }
 0x348   :  { %1162 = vmatprep.subr.mxu0 %v3381_v28  ;;  %1233 = vmatprep.subr.mxu1 %v3382_v7 }
 0x349   :  { %1163 = vmatpush1.msra.mxu0 %v3383_v37  ;;  %1234 = vmatpush1.msra.mxu1 %v3408_v13 }
 0x34a   :  { %1164 = vmatprep.subr.mxu0 %v3409_v14  ;;  %1235 = vmatprep.subr.mxu1 %v3410_v15 }
 0x34b   :  { %1165 = vmatpush1.msra.mxu0 %v3411_v16  ;;  %1236 = vmatpush1.msra.mxu1 %v3412_v17 }
 0x34c   :  { %1166 = vmatprep.subr.mxu0 %v3413_v18  ;;  %1237 = vmatprep.subr.mxu1 %v3414_v20 }
 0x34d   :  { %1167 = vmatpush1.msra.mxu0 %v3415_v21  ;;  %1238 = vmatpush1.msra.mxu1 %v3416_v22 }
 0x34e   :  { %1168 = vmatprep.subr.mxu0 %v3417_v23  ;;  %1239 = vmatprep.subr.mxu1 %v3418_v24  ;;  %v3438_v23 = vld [vmem:[#allocation14_spill] sm:$0xff] }
 0x34f   :  { %1169 = vmatpush1.msra.mxu0 %v3419_v25  ;;  %1240 = vmatpush1.msra.mxu1 %v3420_v26  ;;  %v3439_v24 = vld [vmem:[#allocation10_spill] sm:$0xff]  ;;  %v2955_v25 = vld [vmem:[#allocation4 + $0x120] sm:$0xff]  ;;  %v2958_v26 = vld [vmem:[#allocation4 + $0x130] sm:$0xff] }
 0x350   :  { %1170 = vmatprep.subr.mxu0 %v3421_v27  ;;  %1241 = vmatprep.subr.mxu1 %v3422_v29  ;;  %v2961_v27 = vld [vmem:[#allocation4 + $0x108] sm:$0xff]  ;;  %v2964_v29 = vld [vmem:[#allocation4 + $0x118] sm:$0xff] }
 0x351   :  { %1171 = vmatpush1.msra.mxu0 %v3423_v30  ;;  %1204 = vmatprep.mubr.f32.mxu0 %v3424_v31  ;;  %v2967_v30 = vld [vmem:[#allocation4 + $0x100] sm:$0xff] }
 0x352   :  { %1242 = vmatpush1.msra.mxu1 %v3425_v32  ;;  %1275 = vmatprep.mubr.f32.mxu1 %v3424_v31  ;;  %v2970_v32 = vld [vmem:[#allocation4 + $0x110] sm:$0xff] }
 0x353   :  { %1317 = vmatprep.subr.mxu0 %v2795_v33  ;;  %1388 = vmatprep.subr.mxu1 %v2798_v34 }
 0x3f2   :  { %v1029_v40 = vpop.f32.mrf.mxu0  ;;  %v1100_v48 = vpop.f32.mrf.mxu1 }
 0x3f3   :  { %v1105_v42 = vadd.f32 %v1029_v40, %v3434_v41  ;;  %v1107_v54 = vadd.f32 %v1100_v48, %v3437_v53  ;;  %v2976_v40 = vld [vmem:[#allocation4 + $0xf8] sm:$0xff]  ;;  %v2979_v41 = vld [vmem:[#allocation4 + $0xe0] sm:$0xff]  ;;  %v2997_v48 = vld [vmem:[#allocation4 + $0xa8] sm:$0xff] }
 0x3f4   :  { %v1031_v43 = vpop.f32.mrf.mxu0  ;;  %v1102_v50 = vpop.f32.mrf.mxu1  ;;  %v3012_v53 = vld [vmem:[#allocation4 + $0x98] sm:$0xff] }
 0x3f5   :  { %v1912_v44 = vmul.f32 -1.442695, %v1105_v42  ;;  %v1106_v47 = vadd.f32 %v1031_v43, %v3435_v45  ;;  %v1108_v52 = vadd.f32 %v1102_v50, %v3436_v51  ;;  %v2982_v42 = vld [vmem:[#allocation4 + $0xf0] sm:$0xff]  ;;  %v2985_v43 = vld [vmem:[#allocation4 + $0xc8] sm:$0xff]  ;;  %v2991_v45 = vld [vmem:[#allocation4 + $0xc0] sm:$0xff] }
 0x3f6   :  { %v3003_v50 = vld [vmem:[#allocation4 + $0xa0] sm:$0xff]  ;;  %v3006_v51 = vld [vmem:[#allocation4 + $0xb0] sm:$0xff] }
 0x3f7   :  { %1984 = vpow2.f32 %v1912_v44  ;;  %v1913_v49 = vmul.f32 -1.442695, %v1106_v47  ;;  %v1914_v56 = vmul.f32 -1.442695, %v1108_v52  ;;  %v2988_v44 = vld [vmem:[#allocation4 + $0xd8] sm:$0xff]  ;;  %v2994_v47 = vld [vmem:[#allocation4 + $0xd0] sm:$0xff] }
 0x3f8   :  { %v3009_v52 = vld [vmem:[#allocation4 + $0x88] sm:$0xff] }
 0x3f9   :  { %1986 = vpow2.f32 %v1913_v49  ;;  %v3000_v49 = vld [vmem:[#allocation4 + $0xb8] sm:$0xff] }
 0x3fa   :  { %1988 = vtanh.f32 %v1107_v54  ;;  %v3015_v54 = vld [vmem:[#allocation4 + $0x80] sm:$0xff] }
 0x3fb   :  { %1990 = vpow2.f32 %v1914_v56  ;;  %v3018_v56 = vld [vmem:[#allocation4 + $0x90] sm:$0xff] }
 0x3fc   :  { %3440 = vst [vmem:[#allocation11_spill] sm:$0xff] %v3018_v56 }
 0x404   :  { %v1985_v57 = vpop.eup %1984 }
 0x405   :  { %v1112_v58 = vadd.f32 1.0, %v1985_v57  ;;  %v3021_v57 = vld [vmem:[#allocation4 + $0x68] sm:$0xff] }
 0x406   :  { %v1987_v59 = vpop.eup %1986  ;;  %3441 = vst [vmem:[#allocation32_spill] sm:$0xff] %v3021_v57 }
 0x407   :  { %1992 = vrcp.f32 %v1112_v58  ;;  %v1118_v28 = vadd.f32 1.0, %v1987_v59  ;;  %v1989_v7 = vpop.eup %1988  ;;  %v3024_v58 = vld [vmem:[#allocation4 + $0x78] sm:$0xff]  ;;  %v3027_v59 = vld [vmem:[#allocation4 + $0x60] sm:$0xff] }
 0x408   :  { %v1991_v37 = vpop.eup %1990  ;;  %3442 = vst [vmem:[#allocation34_spill] sm:$0xff] %v3024_v58  ;;  %3443 = vst [vmem:[#allocation35_spill] sm:$0xff] %v3027_v59 }
 0x409   :  { %1994 = vrcp.f32 %v1118_v28  ;;  %v1125_v16 = vadd.f32 1.0, %v1991_v37  ;;  %v3030_v28 = vld [vmem:[#allocation4 + $0x70] sm:$0xff]  ;;  %v3036_v37 = vld [vmem:[#allocation4 + $0x58] sm:$0xff] }
 0x40a   :  { %3444 = vst [vmem:[#allocation33_spill] sm:$0xff] %v3030_v28  ;;  %3446 = vst [vmem:[#allocation16_spill] sm:$0xff] %v3036_v37 }
 0x40b   :  { %1996 = vrcp.f32 %v1125_v16  ;;  %v3048_v16 = vld [vmem:[#allocation4 + $0x38] sm:$0xff] }
 0x40c   :  { %3450 = vst [vmem:[#allocation20_spill] sm:$0xff] %v3048_v16 }
 0x414   :  { %v1993_v13 = vpop.eup %1992 }
 0x415   :  { %v1129_v14 = vmul.f32 %v1993_v13, %v1989_v7  ;;  %v3033_v7 = vld [vmem:[#allocation4 + $0x48] sm:$0xff]  ;;  %v3039_v13 = vld [vmem:[#allocation4 + $0x40] sm:$0xff] }
 0x416   :  { %v1995_v15 = vpop.eup %1994  ;;  %3445 = vst [vmem:[#allocation15_spill] sm:$0xff] %v3033_v7  ;;  %3447 = vst [vmem:[#allocation17_spill] sm:$0xff] %v3039_v13 }
 0x417   :  { %v1128_v17 = vmul.f32 %v1995_v15, %v2806_v10  ;;  %v2973_v10 = vld [vmem:[#allocation4 + $0xe8] sm:$0xff] }
 0x418   :  { %v1997_v20 = vpop.eup %1996  ;;  %v3045_v15 = vld [vmem:[#allocation4 + $0x28] sm:$0xff] }
 0x419   :  { %v2928_v18 = vadd.f32 %v1129_v14, %v1128_v17  ;;  %v3042_v14 = vld [vmem:[#allocation4 + $0x50] sm:$0xff]  ;;  %3449 = vst [vmem:[#allocation19_spill] sm:$0xff] %v3045_v15  ;;  %v3051_v17 = vld [vmem:[#allocation4 + $0x20] sm:$0xff] }
 0x41a   :  { %3448 = vst [vmem:[#allocation18_spill] sm:$0xff] %v3042_v14  ;;  %3451 = vst [vmem:[#allocation21_spill] sm:$0xff] %v3051_v17 }
 0x41b   :  { %1998 = vtanh.f32 %v2928_v18 }
 0x428   :  { %v1999_v21 = vpop.eup %1998 }
 0x429   :  { %v1132_v22 = vmul.f32 %v1999_v21, %v1997_v20  ;;  %v3054_v20 = vld [vmem:[#allocation4 + $0x30] sm:$0xff]  ;;  %v3057_v21 = vld [vmem:[#allocation4 + $0x8] sm:$0xff] }
 0x42a   :  { %3452 = vst [vmem:[#allocation22_spill] sm:$0xff] %v3054_v20  ;;  %3453 = vst [vmem:[#allocation23_spill] sm:$0xff] %v3057_v21 }
 0x42b   :  { %1205 = vmatmul.mubr.f32.vlgmr.msra.gmra.mxu0 %v1132_v22  ;;  %1276 = vmatmul.mubr.f32.vlgmr.msra.gmra.mxu1 %v1132_v22  ;;  %v3060_v22 = vld [vmem:[#allocation4 + $0x18] sm:$0xff] }
 0x42c   :  { %1318 = vmatpush1.msra.mxu0 %v2809_v46  ;;  %1389 = vmatpush1.msra.mxu1 %v2812_v4  ;;  %3454 = vst [vmem:[#allocation24_spill] sm:$0xff] %v3060_v22 }
 0x42d   :  { %1319 = vmatprep.subr.mxu0 %v2815_v3  ;;  %1390 = vmatprep.subr.mxu1 %v2818_v8 }
 0x42e   :  { %1320 = vmatpush1.msra.mxu0 %v2821_v61  ;;  %1391 = vmatpush1.msra.mxu1 %v2824_v0 }
 0x42f   :  { %1321 = vmatprep.subr.mxu0 %v2827_v2  ;;  %1392 = vmatprep.subr.mxu1 %v2830_v6 }
 0x430   :  { %1322 = vmatpush1.msra.mxu0 %v2833_v63  ;;  %1393 = vmatpush1.msra.mxu1 %v2836_v60 }
 0x431   :  { %1323 = vmatprep.subr.mxu0 %v2839_v5  ;;  %1394 = vmatprep.subr.mxu1 %v2842_v12 }
 0x432   :  { %1324 = vmatpush1.msra.mxu0 %v2845_v11  ;;  %1395 = vmatpush1.msra.mxu1 %v2848_v19 }
 0x433   :  { %1325 = vmatprep.subr.mxu0 %v2851_v9  ;;  %1396 = vmatprep.subr.mxu1 %v2854_v35 }
 0x434   :  { %1326 = vmatpush1.msra.mxu0 %v3438_v23  ;;  %1397 = vmatpush1.msra.mxu1 %v3439_v24 }
 0x435   :  { %1327 = vmatprep.subr.mxu0 %v2863_v39  ;;  %1398 = vmatprep.subr.mxu1 %v2866_v55 }
 0x436   :  { %1328 = vmatpush1.msra.mxu0 %v2869_v1  ;;  %1399 = vmatpush1.msra.mxu1 %v2872_v62 }
 0x437   :  { %1329 = vmatprep.subr.mxu0 %v2875_v36  ;;  %1400 = vmatprep.subr.mxu1 %v2878_v38 }
 0x438   :  { %1330 = vmatpush1.msra.mxu0 %v2955_v25  ;;  %1401 = vmatpush1.msra.mxu1 %v2958_v26 }
 0x439   :  { %1331 = vmatprep.subr.mxu0 %v2961_v27  ;;  %1402 = vmatprep.subr.mxu1 %v2964_v29 }
 0x43a   :  { %1332 = vmatpush1.msra.mxu0 %v2967_v30  ;;  %1403 = vmatpush1.msra.mxu1 %v2970_v32 }
 0x43b   :  { %1333 = vmatprep.subr.mxu0 %v2973_v10  ;;  %1404 = vmatprep.subr.mxu1 %v2976_v40 }
 0x43c   :  { %1334 = vmatpush1.msra.mxu0 %v2979_v41  ;;  %1405 = vmatpush1.msra.mxu1 %v2982_v42 }
 0x43d   :  { %1335 = vmatprep.subr.mxu0 %v2985_v43  ;;  %1406 = vmatprep.subr.mxu1 %v2988_v44 }
 0x43e   :  { %1336 = vmatpush1.msra.mxu0 %v2991_v45  ;;  %1407 = vmatpush1.msra.mxu1 %v2994_v47 }
 0x43f   :  { %1337 = vmatprep.subr.mxu0 %v2997_v48  ;;  %1408 = vmatprep.subr.mxu1 %v3000_v49 }
 0x440   :  { %1338 = vmatpush1.msra.mxu0 %v3003_v50  ;;  %1409 = vmatpush1.msra.mxu1 %v3006_v51 }
 0x441   :  { %1339 = vmatprep.subr.mxu0 %v3009_v52  ;;  %1410 = vmatprep.subr.mxu1 %v3012_v53 }
 0x442   :  { %1340 = vmatpush1.msra.mxu0 %v3015_v54  ;;  %1411 = vmatpush1.msra.mxu1 %v3018_v56 }
 0x443   :  { %1341 = vmatprep.subr.mxu0 %v3021_v57  ;;  %1412 = vmatprep.subr.mxu1 %v3024_v58  ;;  %v3460_v58 = vld [vmem:[#allocation45_spill] sm:$0xff] }
 0x444   :  { %1342 = vmatpush1.msra.mxu0 %v3027_v59  ;;  %1413 = vmatpush1.msra.mxu1 %v3030_v28  ;;  %v3459_v59 = vld [vmem:[#allocation47_spill] sm:$0xff] }
 0x445   :  { %1343 = vmatprep.subr.mxu0 %v3033_v7  ;;  %1414 = vmatprep.subr.mxu1 %v3036_v37 }
 0x446   :  { %1344 = vmatpush1.msra.mxu0 %v3039_v13  ;;  %1415 = vmatpush1.msra.mxu1 %v3042_v14  ;;  %v3458_v13 = vld [vmem:[#allocation46_spill] sm:$0xff] }
 0x447   :  { %1345 = vmatprep.subr.mxu0 %v3045_v15  ;;  %1416 = vmatprep.subr.mxu1 %v3048_v16  ;;  %v3063_v15 = vld [vmem:[#allocation4] sm:$0xff]  ;;  %v3067_v16 = vld [vmem:[#allocation4 + $0x10] sm:$0xff] }
 0x448   :  { %1346 = vmatpush1.msra.mxu0 %v3051_v17  ;;  %1417 = vmatpush1.msra.mxu1 %v3054_v20  ;;  %3455 = vst [vmem:[#allocation25_spill] sm:$0xff] %v3063_v15  ;;  %3456 = vst [vmem:[#allocation26_spill] sm:$0xff] %v3067_v16  ;;  %v3457_v20 = vld [vmem:[#allocation44_spill] sm:$0xff] }
 0x449   :  { %1347 = vmatprep.subr.mxu0 %v3057_v21  ;;  %1418 = vmatprep.subr.mxu1 %v3060_v22 }
 0x44a   :  { %1348 = vmatpush1.msra.mxu0 %v3063_v15  ;;  %1381 = vmatprep.mubr.f32.mxu0 %v3424_v31 }
 0x44b   :  { %1419 = vmatpush1.msra.mxu1 %v3067_v16  ;;  %1452 = vmatprep.mubr.f32.mxu1 %v3424_v31 }
 0x44c   :  { %1494 = vmatprep.subr.mxu0 %v2795_v33  ;;  %1565 = vmatprep.subr.mxu1 %v2798_v34 }
 0x4eb   :  { %v1206_v21 = vpop.f32.mrf.mxu0  ;;  %v1277_v15 = vpop.f32.mrf.mxu1 }
 0x4ec   :  { %v1282_v17 = vadd.f32 %v1206_v21, %v3457_v20  ;;  %v1284_v31 = vadd.f32 %v1277_v15, %v3460_v58  ;;  %v3466_v15 = vld [vmem:[#allocation15_spill] sm:$0xff] }
 0x4ed   :  { %v1208_v22 = vpop.f32.mrf.mxu0  ;;  %v1279_v28 = vpop.f32.mrf.mxu1 }
 0x4ee   :  { %v1915_v14 = vmul.f32 -1.442695, %v1282_v17  ;;  %v1283_v37 = vadd.f32 %v1208_v22, %v3458_v13  ;;  %v1285_v16 = vadd.f32 %v1279_v28, %v3459_v59  ;;  %v3465_v28 = vld [vmem:[#allocation33_spill] sm:$0xff] }
 0x4f0   :  { %2000 = vpow2.f32 %v1915_v14  ;;  %v1916_v7 = vmul.f32 -1.442695, %v1283_v37  ;;  %v1917_v57 = vmul.f32 -1.442695, %v1285_v16  ;;  %v3467_v16 = vld [vmem:[#allocation16_spill] sm:$0xff] }
 0x4f2   :  { %2002 = vpow2.f32 %v1916_v7 }
 0x4f3   :  { %2004 = vtanh.f32 %v1284_v31 }
 0x4f4   :  { %2006 = vpow2.f32 %v1917_v57  ;;  %v3464_v57 = vld [vmem:[#allocation35_spill] sm:$0xff] }
 0x4fd   :  { %v2001_v33 = vpop.eup %2000 }
 0x4fe   :  { %v1289_v56 = vadd.f32 1.0, %v2001_v33 }
 0x4ff   :  { %v2003_v34 = vpop.eup %2002 }
 0x500   :  { %2008 = vrcp.f32 %v1289_v56  ;;  %v1295_v20 = vadd.f32 1.0, %v2003_v34  ;;  %v2005_v17 = vpop.eup %2004  ;;  %v3461_v34 = vld [vmem:[#allocation11_spill] sm:$0xff]  ;;  %v3463_v56 = vld [vmem:[#allocation34_spill] sm:$0xff] }
 0x501   :  { %v2007_v13 = vpop.eup %2006 }
 0x502   :  { %2010 = vrcp.f32 %v1295_v20  ;;  %v1302_v7 = vadd.f32 1.0, %v2007_v13  ;;  %v3468_v20 = vld [vmem:[#allocation17_spill] sm:$0xff]  ;;  %v3470_v13 = vld [vmem:[#allocation19_spill] sm:$0xff] }
 0x504   :  { %2012 = vrcp.f32 %v1302_v7  ;;  %v3474_v7 = vld [vmem:[#allocation23_spill] sm:$0xff] }
 0x50d   :  { %v2009_v14 = vpop.eup %2008 }
 0x50e   :  { %v1306_v21 = vmul.f32 %v2009_v14, %v2005_v17  ;;  %v3469_v17 = vld [vmem:[#allocation18_spill] sm:$0xff]  ;;  %v3471_v14 = vld [vmem:[#allocation20_spill] sm:$0xff] }
 0x50f   :  { %v2011_v37 = vpop.eup %2010 }
 0x510   :  { %v1305_v22 = vmul.f32 %v2011_v37, %v2928_v18  ;;  %v3462_v18 = vld [vmem:[#allocation32_spill] sm:$0xff]  ;;  %v3473_v37 = vld [vmem:[#allocation22_spill] sm:$0xff] }
 0x511   :  { %v2013_v33 = vpop.eup %2012 }
 0x512   :  { %v3078_v59 = vadd.f32 %v1306_v21, %v1305_v22  ;;  %v3472_v21 = vld [vmem:[#allocation21_spill] sm:$0xff]  ;;  %v3475_v22 = vld [vmem:[#allocation24_spill] sm:$0xff] }
 0x514   :  { %2014 = vtanh.f32 %v3078_v59 }
 0x521   :  { %v2015_v31 = vpop.eup %2014 }
 0x522   :  { %v1309_v58 = vmul.f32 %v2015_v31, %v2013_v33  ;;  %v3476_v33 = vld [vmem:[#allocation25_spill] sm:$0xff]  ;;  %v3477_v31 = vmov 0.0  }
 0x524   :  { %1382 = vmatmul.mubr.f32.vlgmr.msra.gmra.mxu0 %v1309_v58  ;;  %1453 = vmatmul.mubr.f32.vlgmr.msra.gmra.mxu1 %v1309_v58  ;;  %v3478_v58 = vld [vmem:[#allocation26_spill] sm:$0xff] }
 0x525   :  { %1495 = vmatpush1.msra.mxu0 %v2809_v46  ;;  %1566 = vmatpush1.msra.mxu1 %v2812_v4 }
 0x526   :  { %1496 = vmatprep.subr.mxu0 %v2815_v3  ;;  %1567 = vmatprep.subr.mxu1 %v2818_v8 }
 0x527   :  { %1497 = vmatpush1.msra.mxu0 %v2821_v61  ;;  %1568 = vmatpush1.msra.mxu1 %v2824_v0 }
 0x528   :  { %1498 = vmatprep.subr.mxu0 %v2827_v2  ;;  %1569 = vmatprep.subr.mxu1 %v2830_v6 }
 0x529   :  { %1499 = vmatpush1.msra.mxu0 %v2833_v63  ;;  %1570 = vmatpush1.msra.mxu1 %v2836_v60 }
 0x52a   :  { %1500 = vmatprep.subr.mxu0 %v2839_v5  ;;  %1571 = vmatprep.subr.mxu1 %v2842_v12 }
 0x52b   :  { %1501 = vmatpush1.msra.mxu0 %v2845_v11  ;;  %1572 = vmatpush1.msra.mxu1 %v2848_v19 }
 0x52c   :  { %1502 = vmatprep.subr.mxu0 %v2851_v9  ;;  %1573 = vmatprep.subr.mxu1 %v2854_v35 }
 0x52d   :  { %1503 = vmatpush1.msra.mxu0 %v3438_v23  ;;  %1574 = vmatpush1.msra.mxu1 %v3439_v24 }
 0x52e   :  { %1504 = vmatprep.subr.mxu0 %v2863_v39  ;;  %1575 = vmatprep.subr.mxu1 %v2866_v55 }
 0x52f   :  { %1505 = vmatpush1.msra.mxu0 %v2869_v1  ;;  %1576 = vmatpush1.msra.mxu1 %v2872_v62 }
 0x530   :  { %1506 = vmatprep.subr.mxu0 %v2875_v36  ;;  %1577 = vmatprep.subr.mxu1 %v2878_v38 }
 0x531   :  { %1507 = vmatpush1.msra.mxu0 %v2955_v25  ;;  %1578 = vmatpush1.msra.mxu1 %v2958_v26 }
 0x532   :  { %1508 = vmatprep.subr.mxu0 %v2961_v27  ;;  %1579 = vmatprep.subr.mxu1 %v2964_v29 }
 0x533   :  { %1509 = vmatpush1.msra.mxu0 %v2967_v30  ;;  %1580 = vmatpush1.msra.mxu1 %v2970_v32 }
 0x534   :  { %1510 = vmatprep.subr.mxu0 %v2973_v10  ;;  %1581 = vmatprep.subr.mxu1 %v2976_v40 }
 0x535   :  { %1511 = vmatpush1.msra.mxu0 %v2979_v41  ;;  %1582 = vmatpush1.msra.mxu1 %v2982_v42 }
 0x536   :  { %1512 = vmatprep.subr.mxu0 %v2985_v43  ;;  %1583 = vmatprep.subr.mxu1 %v2988_v44 }
 0x537   :  { %1513 = vmatpush1.msra.mxu0 %v2991_v45  ;;  %1584 = vmatpush1.msra.mxu1 %v2994_v47 }
 0x538   :  { %1514 = vmatprep.subr.mxu0 %v2997_v48  ;;  %1585 = vmatprep.subr.mxu1 %v3000_v49 }
 0x539   :  { %1515 = vmatpush1.msra.mxu0 %v3003_v50  ;;  %1586 = vmatpush1.msra.mxu1 %v3006_v51 }
 0x53a   :  { %1516 = vmatprep.subr.mxu0 %v3009_v52  ;;  %1587 = vmatprep.subr.mxu1 %v3012_v53 }
 0x53b   :  { %1517 = vmatpush1.msra.mxu0 %v3015_v54  ;;  %1588 = vmatpush1.msra.mxu1 %v3461_v34 }
 0x53c   :  { %1518 = vmatprep.subr.mxu0 %v3462_v18  ;;  %1589 = vmatprep.subr.mxu1 %v3463_v56  ;;  %v3484_v56 = vld [vmem:[#allocation49_spill] sm:$0xff] }
 0x53d   :  { %1519 = vmatpush1.msra.mxu0 %v3464_v57  ;;  %1590 = vmatpush1.msra.mxu1 %v3465_v28  ;;  %v3483_v57 = vld [vmem:[#allocation51_spill] sm:$0xff] }
 0x53e   :  { %1520 = vmatprep.subr.mxu0 %v3466_v15  ;;  %1591 = vmatprep.subr.mxu1 %v3467_v16 }
 0x53f   :  { %1521 = vmatpush1.msra.mxu0 %v3468_v20  ;;  %1592 = vmatpush1.msra.mxu1 %v3469_v17  ;;  %v3479_v17 = vld [vmem:[#allocation12_spill] sm:$0xff] }
 0x540   :  { %1522 = vmatprep.subr.mxu0 %v3470_v13  ;;  %1593 = vmatprep.subr.mxu1 %v3471_v14  ;;  %v3480_v13 = vld [vmem:[#allocation13_spill] sm:$0xff] }
 0x541   :  { %1523 = vmatpush1.msra.mxu0 %v3472_v21  ;;  %1594 = vmatpush1.msra.mxu1 %v3473_v37  ;;  %v3481_v21 = vld [vmem:[#allocation48_spill] sm:$0xff] }
 0x542   :  { %1524 = vmatprep.subr.mxu0 %v3474_v7  ;;  %1595 = vmatprep.subr.mxu1 %v3475_v22  ;;  %v3482_v7 = vld [vmem:[#allocation50_spill] sm:$0xff] }
 0x543   :  { %1525 = vmatpush1.msra.mxu0 %v3476_v33  ;;  %1558 = vmatprep.mubr.f32.mxu0 %v3477_v31 }
 0x544   :  { %1596 = vmatpush1.msra.mxu1 %v3478_v58  ;;  %1629 = vmatprep.mubr.f32.mxu1 %v3477_v31 }
 0x545   :  { %1671 = vmatprep.subr.mxu0 %v3479_v17  ;;  %1742 = vmatprep.subr.mxu1 %v3480_v13 }
 0x5e4   :  { %v1383_v14 = vpop.f32.mrf.mxu0  ;;  %v1454_v22 = vpop.f32.mrf.mxu1 }
 0x5e5   :  { %v1459_v20 = vadd.f32 %v1383_v14, %v3481_v21  ;;  %v1461_v31 = vadd.f32 %v1454_v22, %v3484_v56 }
 0x5e6   :  { %v1385_v37 = vpop.f32.mrf.mxu0  ;;  %v1456_v28 = vpop.f32.mrf.mxu1 }
 0x5e7   :  { %v1918_v16 = vmul.f32 -1.442695, %v1459_v20  ;;  %v1460_v15 = vadd.f32 %v1385_v37, %v3482_v7  ;;  %v1462_v58 = vadd.f32 %v1456_v28, %v3483_v57 }
 0x5e9   :  { %2016 = vpow2.f32 %v1918_v16  ;;  %v1919_v33 = vmul.f32 -1.442695, %v1460_v15  ;;  %v1920_v18 = vmul.f32 -1.442695, %v1462_v58  ;;  %v3507_v58 = vld [vmem:[#allocation56_spill] sm:$0xff] }
 0x5eb   :  { %2018 = vpow2.f32 %v1919_v33 }
 0x5ec   :  { %2020 = vtanh.f32 %v1461_v31 }
 0x5ed   :  { %2022 = vpow2.f32 %v1920_v18 }
 0x5f6   :  { %v2017_v17 = vpop.eup %2016 }
 0x5f7   :  { %v1466_v34 = vadd.f32 1.0, %v2017_v17 }
 0x5f8   :  { %v2019_v13 = vpop.eup %2018 }
 0x5f9   :  { %2024 = vrcp.f32 %v1466_v34  ;;  %v1472_v14 = vadd.f32 1.0, %v2019_v13  ;;  %v2021_v20 = vpop.eup %2020 }
 0x5fa   :  { %v2023_v21 = vpop.eup %2022 }
 0x5fb   :  { %2026 = vrcp.f32 %v1472_v14  ;;  %v1479_v7 = vadd.f32 1.0, %v2023_v21 }
 0x5fd   :  { %2028 = vrcp.f32 %v1479_v7  ;;  %v3509_v7 = vld [vmem:[#allocation59_spill] sm:$0xff] }
 0x606   :  { %v2025_v16 = vpop.eup %2024 }
 0x607   :  { %v1483_v37 = vmul.f32 %v2025_v16, %v2021_v20  ;;  %v3508_v20 = vld [vmem:[#allocation58_spill] sm:$0xff] }
 0x608   :  { %v2027_v15 = vpop.eup %2026 }
 0x609   :  { %v1482_v33 = vmul.f32 %v2027_v15, %v3078_v59 }
 0x60a   :  { %v2029_v56 = vpop.eup %2028 }
 0x60b   :  { %v3152_v57 = vadd.f32 %v1483_v37, %v1482_v33 }
 0x60d   :  { %2030 = vtanh.f32 %v3152_v57 }
 0x61a   :  { %v2031_v28 = vpop.eup %2030 }
 0x61b   :  { %v1486_v22 = vmul.f32 %v2031_v28, %v2029_v56 }
 0x61d   :  { %1559 = vmatmul.mubr.f32.vlgmr.msra.gmra.mxu0 %v1486_v22  ;;  %1630 = vmatmul.mubr.f32.vlgmr.msra.gmra.mxu1 %v1486_v22 }
 0x61e   :  { %1672 = vmatpush1.msra.mxu0 %v2809_v46  ;;  %1743 = vmatpush1.msra.mxu1 %v2812_v4  ;;  %v3485_v46 = vld [vmem:[#allocation11_spill] sm:$0xff]  ;;  %v3486_v4 = vld [vmem:[#allocation32_spill] sm:$0xff] }
 0x61f   :  { %1673 = vmatprep.subr.mxu0 %v2815_v3  ;;  %1744 = vmatprep.subr.mxu1 %v2818_v8  ;;  %v3487_v3 = vld [vmem:[#allocation34_spill] sm:$0xff]  ;;  %v3488_v8 = vld [vmem:[#allocation35_spill] sm:$0xff] }
 0x620   :  { %1674 = vmatpush1.msra.mxu0 %v2821_v61  ;;  %1745 = vmatpush1.msra.mxu1 %v2824_v0  ;;  %v3489_v61 = vld [vmem:[#allocation33_spill] sm:$0xff]  ;;  %v3490_v0 = vld [vmem:[#allocation15_spill] sm:$0xff] }
 0x621   :  { %1675 = vmatprep.subr.mxu0 %v2827_v2  ;;  %1746 = vmatprep.subr.mxu1 %v2830_v6  ;;  %v3491_v2 = vld [vmem:[#allocation16_spill] sm:$0xff]  ;;  %v3492_v6 = vld [vmem:[#allocation17_spill] sm:$0xff] }
 0x622   :  { %1676 = vmatpush1.msra.mxu0 %v2833_v63  ;;  %1747 = vmatpush1.msra.mxu1 %v2836_v60  ;;  %v3493_v63 = vld [vmem:[#allocation18_spill] sm:$0xff]  ;;  %v3494_v60 = vld [vmem:[#allocation19_spill] sm:$0xff] }
 0x623   :  { %1677 = vmatprep.subr.mxu0 %v2839_v5  ;;  %1748 = vmatprep.subr.mxu1 %v2842_v12  ;;  %v3495_v5 = vld [vmem:[#allocation20_spill] sm:$0xff]  ;;  %v3496_v12 = vld [vmem:[#allocation21_spill] sm:$0xff] }
 0x624   :  { %1678 = vmatpush1.msra.mxu0 %v2845_v11  ;;  %1749 = vmatpush1.msra.mxu1 %v2848_v19  ;;  %v3497_v11 = vld [vmem:[#allocation22_spill] sm:$0xff]  ;;  %v3498_v19 = vld [vmem:[#allocation23_spill] sm:$0xff] }
 0x625   :  { %1679 = vmatprep.subr.mxu0 %v2851_v9  ;;  %1750 = vmatprep.subr.mxu1 %v2854_v35  ;;  %v3499_v9 = vld [vmem:[#allocation24_spill] sm:$0xff]  ;;  %v3500_v35 = vld [vmem:[#allocation25_spill] sm:$0xff] }
 0x626   :  { %1680 = vmatpush1.msra.mxu0 %v3438_v23  ;;  %1751 = vmatpush1.msra.mxu1 %v3439_v24  ;;  %v3504_v24 = vld [vmem:[#allocation54_spill] sm:$0xff] }
 0x627   :  { %1681 = vmatprep.subr.mxu0 %v2863_v39  ;;  %1752 = vmatprep.subr.mxu1 %v2866_v55  ;;  %v3503_v55 = vld [vmem:[#allocation52_spill] sm:$0xff] }
 0x628   :  { %1682 = vmatpush1.msra.mxu0 %v2869_v1  ;;  %1753 = vmatpush1.msra.mxu1 %v2872_v62 }
 0x629   :  { %1683 = vmatprep.subr.mxu0 %v2875_v36  ;;  %1754 = vmatprep.subr.mxu1 %v2878_v38  ;;  %v3501_v36 = vmov 0.0   ;;  %v3502_v38 = vld [vmem:[#allocation26_spill] sm:$0xff] }
 0x62a   :  { %1684 = vmatpush1.msra.mxu0 %v2955_v25  ;;  %1755 = vmatpush1.msra.mxu1 %v2958_v26 }
 0x62b   :  { %1685 = vmatprep.subr.mxu0 %v2961_v27  ;;  %1756 = vmatprep.subr.mxu1 %v2964_v29 }
 0x62c   :  { %1686 = vmatpush1.msra.mxu0 %v2967_v30  ;;  %1757 = vmatpush1.msra.mxu1 %v2970_v32  ;;  %v3505_v30 = vld [vmem:[#allocation55_spill] sm:$0xff] }
 0x62d   :  { %1687 = vmatprep.subr.mxu0 %v2973_v10  ;;  %1758 = vmatprep.subr.mxu1 %v2976_v40  ;;  %v3506_v10 = vld [vmem:[#allocation53_spill] sm:$0xff] }
 0x62e   :  { %1688 = vmatpush1.msra.mxu0 %v2979_v41  ;;  %1759 = vmatpush1.msra.mxu1 %v2982_v42 }
 0x62f   :  { %1689 = vmatprep.subr.mxu0 %v2985_v43  ;;  %1760 = vmatprep.subr.mxu1 %v2988_v44 }
 0x630   :  { %1690 = vmatpush1.msra.mxu0 %v2991_v45  ;;  %1761 = vmatpush1.msra.mxu1 %v2994_v47 }
 0x631   :  { %1691 = vmatprep.subr.mxu0 %v2997_v48  ;;  %1762 = vmatprep.subr.mxu1 %v3000_v49 }
 0x632   :  { %1692 = vmatpush1.msra.mxu0 %v3003_v50  ;;  %1763 = vmatpush1.msra.mxu1 %v3006_v51 }
 0x633   :  { %1693 = vmatprep.subr.mxu0 %v3009_v52  ;;  %1764 = vmatprep.subr.mxu1 %v3012_v53 }
 0x634   :  { %1694 = vmatpush1.msra.mxu0 %v3015_v54  ;;  %1765 = vmatpush1.msra.mxu1 %v3485_v46 }
 0x635   :  { %1695 = vmatprep.subr.mxu0 %v3486_v4  ;;  %1766 = vmatprep.subr.mxu1 %v3487_v3 }
 0x636   :  { %1696 = vmatpush1.msra.mxu0 %v3488_v8  ;;  %1767 = vmatpush1.msra.mxu1 %v3489_v61 }
 0x637   :  { %1697 = vmatprep.subr.mxu0 %v3490_v0  ;;  %1768 = vmatprep.subr.mxu1 %v3491_v2 }
 0x638   :  { %1698 = vmatpush1.msra.mxu0 %v3492_v6  ;;  %1769 = vmatpush1.msra.mxu1 %v3493_v63 }
 0x639   :  { %1699 = vmatprep.subr.mxu0 %v3494_v60  ;;  %1770 = vmatprep.subr.mxu1 %v3495_v5 }
 0x63a   :  { %1700 = vmatpush1.msra.mxu0 %v3496_v12  ;;  %1771 = vmatpush1.msra.mxu1 %v3497_v11 }
 0x63b   :  { %1701 = vmatprep.subr.mxu0 %v3498_v19  ;;  %1772 = vmatprep.subr.mxu1 %v3499_v9  ;;  %v1927_v19 = vld [vmem:[%s3238_s4] ss:$0 sm:$0xff] }
 0x63c   :  { %1702 = vmatpush1.msra.mxu0 %v3500_v35  ;;  %1735 = vmatprep.mubr.f32.mxu0 %v3501_v36 }
 0x63d   :  { %1773 = vmatpush1.msra.mxu1 %v3502_v38  ;;  %1806 = vmatprep.mubr.f32.mxu1 %v3501_v36  ;;  %v2176_v36 = vmov 0   ;;  %v1928_v38 = vld [vmem:[#allocation3] ss:$0 sm:$0xff] }
 0x63e   :  { %1935 = vset.pattern.permute.xlu0 %v2176_v36 }
 0x6dd   :  { %v1560_v39 = vpop.f32.mrf.mxu0  ;;  %v1631_v26 = vpop.f32.mrf.mxu1 }
 0x6de   :  { %v1636_v1 = vadd.f32 %v1560_v39, %v3503_v55  ;;  %v1638_v40 = vadd.f32 %v1631_v26, %v3506_v10 }
 0x6df   :  { %v1562_v62 = vpop.f32.mrf.mxu0  ;;  %v1633_v29 = vpop.f32.mrf.mxu1 }
 0x6e0   :  { %v1921_v23 = vmul.f32 -1.442695, %v1636_v1  ;;  %v1637_v25 = vadd.f32 %v1562_v62, %v3504_v24  ;;  %v1639_v32 = vadd.f32 %v1633_v29, %v3505_v30 }
 0x6e2   :  { %2032 = vpow2.f32 %v1921_v23  ;;  %v1922_v27 = vmul.f32 -1.442695, %v1637_v25  ;;  %v1923_v41 = vmul.f32 -1.442695, %v1639_v32 }
 0x6e4   :  { %2034 = vpow2.f32 %v1922_v27 }
 0x6e5   :  { %2036 = vtanh.f32 %v1638_v40 }
 0x6e6   :  { %2038 = vpow2.f32 %v1923_v41 }
 0x6ef   :  { %v2033_v42 = vpop.eup %2032 }
 0x6f0   :  { %v1643_v43 = vadd.f32 1.0, %v2033_v42 }
 0x6f1   :  { %v2035_v44 = vpop.eup %2034 }
 0x6f2   :  { %2040 = vrcp.f32 %v1643_v43  ;;  %v1649_v45 = vadd.f32 1.0, %v2035_v44  ;;  %v2037_v47 = vpop.eup %2036 }
 0x6f3   :  { %v2039_v48 = vpop.eup %2038 }
 0x6f4   :  { %2042 = vrcp.f32 %v1649_v45  ;;  %v1656_v52 = vadd.f32 1.0, %v2039_v48 }
 0x6f6   :  { %2044 = vrcp.f32 %v1656_v52 }
 0x6ff   :  { %v2041_v49 = vpop.eup %2040 }
 0x700   :  { %v1660_v50 = vmul.f32 %v2041_v49, %v2037_v47 }
 0x701   :  { %v2043_v51 = vpop.eup %2042 }
 0x702   :  { %v1659_v53 = vmul.f32 %v2043_v51, %v3152_v57  ;;  %v3510_v57 = vld [vmem:[#allocation57_spill] sm:$0xff] }
 0x703   :  { %v2045_v59 = vpop.eup %2044 }
 0x704   :  { %v1661_v54 = vadd.f32 %v1660_v50, %v1659_v53 }
 0x706   :  { %2046 = vtanh.f32 %v1661_v54 }
 0x713   :  { %v2047_v34 = vpop.eup %2046 }
 0x714   :  { %v1663_v18 = vmul.f32 %v2047_v34, %v2045_v59 }
 0x716   :  { %1736 = vmatmul.mubr.f32.vlgmr.msra.gmra.mxu0 %v1663_v18  ;;  %1807 = vmatmul.mubr.f32.vlgmr.msra.gmra.mxu1 %v1663_v18 }
 0x7d6   :  { %v1737_v31 = vpop.f32.mrf.mxu0  ;;  %v1808_v16 = vpop.f32.mrf.mxu1 }
 0x7d7   :  { %v1813_v17 = vadd.f32 %v1737_v31, %v3507_v58  ;;  %v1815_v56 = vadd.f32 %v1808_v16, %v3510_v57 }
 0x7d8   :  { %v1739_v13 = vpop.f32.mrf.mxu0  ;;  %v1810_v15 = vpop.f32.mrf.mxu1 }
 0x7d9   :  { %v1924_v14 = vmul.f32 -1.442695, %v1813_v17  ;;  %v1814_v21 = vadd.f32 %v1739_v13, %v3508_v20  ;;  %v1816_v33 = vadd.f32 %v1810_v15, %v3509_v7 }
 0x7db   :  { %2048 = vpow2.f32 %v1924_v14  ;;  %v1925_v37 = vmul.f32 -1.442695, %v1814_v21  ;;  %v1926_v28 = vmul.f32 -1.442695, %v1816_v33 }
 0x7dd   :  { %2050 = vpow2.f32 %v1925_v37 }
 0x7de   :  { %2052 = vtanh.f32 %v1815_v56 }
 0x7df   :  { %2054 = vpow2.f32 %v1926_v28 }
 0x7e8   :  { %v2049_v22 = vpop.eup %2048 }
 0x7e9   :  { %v1820_v46 = vadd.f32 1.0, %v2049_v22 }
 0x7ea   :  { %v2051_v4 = vpop.eup %2050 }
 0x7eb   :  { %2056 = vrcp.f32 %v1820_v46  ;;  %v1826_v3 = vadd.f32 1.0, %v2051_v4  ;;  %v2053_v8 = vpop.eup %2052 }
 0x7ec   :  { %v2055_v61 = vpop.eup %2054 }
 0x7ed   :  { %2058 = vrcp.f32 %v1826_v3  ;;  %v1833_v63 = vadd.f32 1.0, %v2055_v61 }
 0x7ef   :  { %2060 = vrcp.f32 %v1833_v63 }
 0x7f8   :  { %v2057_v0 = vpop.eup %2056 }
 0x7f9   :  { %v1837_v2 = vmul.f32 %v2057_v0, %v2053_v8 }
 0x7fa   :  { %v2059_v6 = vpop.eup %2058 }
 0x7fb   :  { %v1836_v60 = vmul.f32 %v2059_v6, %v1661_v54 }
 0x7fc   :  { %v2061_v12 = vpop.eup %2060 }
 0x7fd   :  { %v1838_v5 = vadd.f32 %v1837_v2, %v1836_v60 }
 0x7ff   :  { %2062 = vtanh.f32 %v1838_v5 }
 0x80c   :  { %v2063_v11 = vpop.eup %2062 }
 0x80d   :  { %v1840_v9 = vmul.f32 %v2063_v11, %v2061_v12 }
 0x80f   :  { %v1848_v35 = vmul.f32 %v1927_v19, %v1840_v9 }
 0x811   :  { %1849 = vadd.xlane.f32.xlu0 %v1848_v35 }
 0x89a   :  { %v1850_v39 = vpop.xlane.xlu0 %1849 }
 0x89b   :  { %v1858_v55 = vadd.f32 %v1928_v38, %v1850_v39 }
 0x89d   :  { %1861 = vperm.xlu0 %1935, %v1858_v55  }
 0x918   :  { %v1862_v1 = vpop.permute.xlu0 %1861 }
 0x919   :  { %1864 = vst [vmem:[#allocation7] sm:$0xff] %v1862_v1 }
 0x91a   :  { %2159 = shalt.err (!%p2156_p9)
}
 0x91b   :  { %1874 = dma.vmem_to_hbm [thread:$0]  %s1872_s12, 128, %s3240_s6, [#allocation6]  }
 0x91c   :  { %2170 = dma.done.wait [#allocation6], 128  }
 0x91d   :  { %2171 = vsyncadd [#allocation6], 4294967168 }
 0x91e   :  { %1878 = vsyncpa [#allocation5], 1 }
 0x91f   :  { %1879 = vsyncpa [#allocation6], 1 }

</bundles_post_ra>
